<compile_context>
chip_gen: v6e
topology: v6e:2x2x1
jax: 0.10.0
libtpu: 0.0.40
codegen_flags: <defaults>
</compile_context>

<pallas_src>
import functools

import jax
import jax.numpy as jnp
from jax.experimental import pallas as pl
from jax.experimental.pallas import tpu as pltpu


def _round_up(x, m):
    return (x + m - 1) // m * m


# ----------------------------------------------------------------------------
# Pallas kernels
# ----------------------------------------------------------------------------
def _conv_relu_pool_kernel(p_ref, w_ref, b_ref, o_ref):
    """Fused conv-as-GEMM + bias + ReLU + 2x2 max-pool epilogue.

    p_ref: [4, K, TM] bf16  im2col patches, axis 0 = (di, dj) pool-window offset
    w_ref: [Cout, K]  bf16  flattened conv weights, inner order (Cin, kh, kw)
    b_ref: [Cout, 1]  f32
    o_ref: [Cout, TM] f32   lane-dense pooled output tile (TM over N*Ho2*Wo2)
    """
    w = w_ref[...]
    acc = jnp.dot(w, p_ref[0], preferred_element_type=jnp.float32)
    for i in range(1, 4):
        acc = jnp.maximum(
            acc, jnp.dot(w, p_ref[i], preferred_element_type=jnp.float32))
    # max_i(relu(x_i + b)) == relu(max_i(x_i) + b)  (shared bias, relu monotone)
    o_ref[...] = jnp.maximum(acc + b_ref[...], 0.0)


def _mlp_kernel(x_ref, w1_ref, b1_ref, w2_ref, b2_ref, w3_ref, b3_ref, o_ref):
    """Fused fc1 -> relu -> fc2 -> relu -> fc3; batch on the lane axis.

    x_ref: [400, TN] bf16 (flattened features x batch tile)
    w*:    PyTorch [out, in] layout, bf16;  b*: [out, 1] f32
    o_ref: [10, TN] f32
    """
    h = jnp.dot(w1_ref[...], x_ref[...], preferred_element_type=jnp.float32)
    h = jnp.maximum(h + b1_ref[...], 0.0)
    h = jnp.dot(w2_ref[...], h.astype(jnp.bfloat16),
                preferred_element_type=jnp.float32)
    h = jnp.maximum(h + b2_ref[...], 0.0)
    h = jnp.dot(w3_ref[...], h.astype(jnp.bfloat16),
                preferred_element_type=jnp.float32)
    o_ref[...] = h + b3_ref[...]


# ----------------------------------------------------------------------------
# Wrappers (pallas_call + plain-JAX im2col glue)
# ----------------------------------------------------------------------------
_VMEM_LIMIT = 32 * 1024 * 1024  # safe on v5e/v6e/v7x; far more than needed here


def _conv_pool_matmul(patches, w2, b, *, tile_m=512):
    """out[Cout, M] = relu(max_over_pool(w2 @ patches[i]) + b), M-tiled grid."""
    _, K, M = patches.shape
    Cout = w2.shape[0]
    tm = min(tile_m, _round_up(M, 128))     # lane-aligned tile, <=512 (fits v7x)
    Mp = _round_up(M, tm)
    if Mp != M:
        patches = jnp.pad(patches, ((0, 0), (0, 0), (0, Mp - M)))
    out = pl.pallas_call(
        _conv_relu_pool_kernel,
        out_shape=jax.ShapeDtypeStruct((Cout, Mp), jnp.float32),
        grid=(Mp // tm,),
        in_specs=[
            pl.BlockSpec((4, K, tm), lambda i: (0, 0, i)),
            pl.BlockSpec((Cout, K), lambda i: (0, 0)),
            pl.BlockSpec((Cout, 1), lambda i: (0, 0)),
        ],
        out_specs=pl.BlockSpec((Cout, tm), lambda i: (0, i)),
        compiler_params=pltpu.CompilerParams(
            dimension_semantics=("parallel",),
            vmem_limit_bytes=_VMEM_LIMIT,
        ),
    )(
        patches.astype(jnp.bfloat16),
        w2.astype(jnp.bfloat16),
        b.reshape(Cout, 1).astype(jnp.float32),
    )
    return out[:, :M]


def _im2col_pooled(x, k):
    """CNHW -> patches [4, Cin*k*k, N*Ho2*Wo2] grouped by 2x2 pool offset.

    patches[p=(di,dj), (c,kh,kw), (n,ho2,wo2)] = x[c, n, 2*ho2+di+kh, 2*wo2+dj+kw]
    """
    C, N, H, W = x.shape
    Ho, Wo = H - k + 1, W - k + 1
    Ho2, Wo2 = Ho // 2, Wo // 2
    # all k*k shifted views of the input: [k*k, C, N, Ho, Wo]
    sl = jnp.stack(
        [x[:, :, i:i + Ho, j:j + Wo] for i in range(k) for j in range(k)],
        axis=0)
    # group conv-output positions by their 2x2 pool-window offset:
    # [4, k*k, C, N, Ho2, Wo2]
    g = jnp.stack(
        [sl[:, :, :, di::2, dj::2] for di in range(2) for dj in range(2)],
        axis=0)
    # K inner order must be (Cin, kh, kw) to match PyTorch weight flattening
    g = jnp.transpose(g, (0, 2, 1, 3, 4, 5))      # [4, C, k*k, N, Ho2, Wo2]
    return g.reshape(4, C * k * k, N * Ho2 * Wo2), (N, Ho2, Wo2)


def conv_relu_pool(x_cnhw, w, b):
    """conv(VALID, stride1) + relu + maxpool2x2, fused. CNHW in / CNHW out."""
    Cout, Cin, k, _ = w.shape
    patches, (N, Ho2, Wo2) = _im2col_pooled(x_cnhw, k)
    w2 = w.reshape(Cout, Cin * k * k)             # no transpose needed
    y = _conv_pool_matmul(patches, w2, b)          # [Cout, N*Ho2*Wo2]
    return y.reshape(Cout, N, Ho2, Wo2)


def fused_mlp(xT, w1, b1, w2, b2, w3, b3, *, tile_n=512):
    """xT: [400, N] -> logits [N, 10]; all three FC layers in one kernel."""
    K, N = xT.shape
    tn = min(tile_n, _round_up(N, 128))
    Np = _round_up(N, tn)
    if Np != N:
        xT = jnp.pad(xT, ((0, 0), (0, Np - N)))
    out = pl.pallas_call(
        _mlp_kernel,
        out_shape=jax.ShapeDtypeStruct((w3.shape[0], Np), jnp.float32),
        grid=(Np // tn,),
        in_specs=[
            pl.BlockSpec((K, tn), lambda i: (0, i)),
            pl.BlockSpec(w1.shape, lambda i: (0, 0)),
            pl.BlockSpec((w1.shape[0], 1), lambda i: (0, 0)),
            pl.BlockSpec(w2.shape, lambda i: (0, 0)),
            pl.BlockSpec((w2.shape[0], 1), lambda i: (0, 0)),
            pl.BlockSpec(w3.shape, lambda i: (0, 0)),
            pl.BlockSpec((w3.shape[0], 1), lambda i: (0, 0)),
        ],
        out_specs=pl.BlockSpec((w3.shape[0], tn), lambda i: (0, i)),
        compiler_params=pltpu.CompilerParams(
            dimension_semantics=("parallel",),
            vmem_limit_bytes=_VMEM_LIMIT,
        ),
    )(
        xT.astype(jnp.bfloat16),
        w1.astype(jnp.bfloat16), b1.reshape(-1, 1).astype(jnp.float32),
        w2.astype(jnp.bfloat16), b2.reshape(-1, 1).astype(jnp.float32),
        w3.astype(jnp.bfloat16), b3.reshape(-1, 1).astype(jnp.float32),
    )
    return out[:, :N].T                            # [N, 10]


# ----------------------------------------------------------------------------
# Model
# ----------------------------------------------------------------------------
def init_params(key):
    def uniform(key, shape, fan_in):
        bound = 1.0 / jnp.sqrt(float(fan_in))
        return jax.random.uniform(key, shape, jnp.float32, -bound, bound)

    ks = jax.random.split(key, 10)
    return {
        "w1": uniform(ks[0], (6, 3, 5, 5), 3 * 5 * 5),
        "b1": uniform(ks[1], (6,), 3 * 5 * 5),
        "w2": uniform(ks[2], (16, 6, 5, 5), 6 * 5 * 5),
        "b2": uniform(ks[3], (16,), 6 * 5 * 5),
        "fc1_w": uniform(ks[4], (120, 400), 400),   # PyTorch [out, in]
        "fc1_b": uniform(ks[5], (120,), 400),
        "fc2_w": uniform(ks[6], (84, 120), 120),
        "fc2_b": uniform(ks[7], (84,), 120),
        "fc3_w": uniform(ks[8], (10, 84), 84),
        "fc3_b": uniform(ks[9], (10,), 84),
    }


def convnet_forward(params, x):
    # x: [N, 3, 32, 32] float32 (NCHW, like PyTorch)
    xc = jnp.transpose(x, (1, 0, 2, 3))                       # CNHW
    xc = conv_relu_pool(xc, params["w1"], params["b1"])       # [6, N, 14, 14]
    xc = conv_relu_pool(xc, params["w2"], params["b2"])       # [16, N, 5, 5]
    C, N, H, W = xc.shape
    # torch .view(-1, 400): per-sample (C, H, W) row-major flatten -> [400, N]
    xT = jnp.transpose(xc, (0, 2, 3, 1)).reshape(C * H * W, N)
    return fused_mlp(
        xT,
        params["fc1_w"], params["fc1_b"],
        params["fc2_w"], params["fc2_b"],
        params["fc3_w"], params["fc3_b"],
    )                                                          # [N, 10]


if __name__ == "__main__":
    key = jax.random.PRNGKey(0)
    pkey, xkey = jax.random.split(key)
    params = init_params(pkey)
    # fc1 (16*5*5 inputs) implies 32x32 spatial input (CIFAR-10); small batch=2.
    x = jax.random.normal(xkey, (2, 3, 32, 32), dtype=jnp.float32)

    out = jax.jit(convnet_forward)(params, x)
    out = jax.block_until_ready(out)

    assert out.shape == (2, 10), out.shape
    assert bool(jnp.all(jnp.isfinite(out)))
    print("KERNEL_OK")
</pallas_src>

<mosaic_0001>
module attributes {stable_mosaic.version = 11 : i64} {
  func.func @_conv_relu_pool_kernel(%arg0: i32, %arg1: memref<4x75x512xbf16, #tpu.memory_space<vmem>>, %arg2: memref<6x75xbf16, #tpu.memory_space<vmem>>, %arg3: memref<6x1xf32, #tpu.memory_space<vmem>>, %arg4: memref<6x512xf32, #tpu.memory_space<vmem>>) attributes {dimension_semantics = [#tpu.dimension_semantics<parallel>], iteration_bounds = array<i64: 1>, scalar_prefetch = 0 : i64, scratch_operands = 0 : i64, tpu.core_type = #tpu.core_type<tc>, window_params = [{transform_indices = @transform_0, window_bounds = array<i64: 4, 75, 512>}, {pipeline_mode = #tpu.pipeline_mode<synchronous>, transform_indices = @transform_1, window_bounds = array<i64: 6, 75>}, {pipeline_mode = #tpu.pipeline_mode<synchronous>, transform_indices = @transform_2, window_bounds = array<i64: 6, 1>}, {transform_indices = @transform_3, window_bounds = array<i64: 6, 512>}]} {
    %c0 = arith.constant 0 : index
    %c0_0 = arith.constant 0 : index
    %0 = vector.load %arg2[%c0, %c0_0] : memref<6x75xbf16, #tpu.memory_space<vmem>>, vector<6x75xbf16>
    %c0_1 = arith.constant 0 : index
    %c0_2 = arith.constant 0 : index
    %c0_3 = arith.constant 0 : index
    %1 = vector.load %arg1[%c0_1, %c0_2, %c0_3] : memref<4x75x512xbf16, #tpu.memory_space<vmem>>, vector<1x75x512xbf16>
    %2 = vector.shape_cast %1 : vector<1x75x512xbf16> to vector<75x512xbf16>
    %cst = arith.constant dense<0.000000e+00> : vector<6x512xf32>
    %3 = tpu.matmul %0, %2, %cst {dimension_numbers = #tpu.dot_dimension_numbers<[1], [0], [0], [1], [0, 0, 1, 1], [], []>} : vector<6x75xbf16>, vector<75x512xbf16>, vector<6x512xf32> -> vector<6x512xf32>
    %c1 = arith.constant 1 : index
    %c0_4 = arith.constant 0 : index
    %c0_5 = arith.constant 0 : index
    %4 = vector.load %arg1[%c1, %c0_4, %c0_5] : memref<4x75x512xbf16, #tpu.memory_space<vmem>>, vector<1x75x512xbf16>
    %5 = vector.shape_cast %4 : vector<1x75x512xbf16> to vector<75x512xbf16>
    %cst_6 = arith.constant dense<0.000000e+00> : vector<6x512xf32>
    %6 = tpu.matmul %0, %5, %cst_6 {dimension_numbers = #tpu.dot_dimension_numbers<[1], [0], [0], [1], [0, 0, 1, 1], [], []>} : vector<6x75xbf16>, vector<75x512xbf16>, vector<6x512xf32> -> vector<6x512xf32>
    %7 = arith.maximumf %3, %6 : vector<6x512xf32>
    %c2 = arith.constant 2 : index
    %c0_7 = arith.constant 0 : index
    %c0_8 = arith.constant 0 : index
    %8 = vector.load %arg1[%c2, %c0_7, %c0_8] : memref<4x75x512xbf16, #tpu.memory_space<vmem>>, vector<1x75x512xbf16>
    %9 = vector.shape_cast %8 : vector<1x75x512xbf16> to vector<75x512xbf16>
    %cst_9 = arith.constant dense<0.000000e+00> : vector<6x512xf32>
    %10 = tpu.matmul %0, %9, %cst_9 {dimension_numbers = #tpu.dot_dimension_numbers<[1], [0], [0], [1], [0, 0, 1, 1], [], []>} : vector<6x75xbf16>, vector<75x512xbf16>, vector<6x512xf32> -> vector<6x512xf32>
    %11 = arith.maximumf %7, %10 : vector<6x512xf32>
    %c3 = arith.constant 3 : index
    %c0_10 = arith.constant 0 : index
    %c0_11 = arith.constant 0 : index
    %12 = vector.load %arg1[%c3, %c0_10, %c0_11] : memref<4x75x512xbf16, #tpu.memory_space<vmem>>, vector<1x75x512xbf16>
    %13 = vector.shape_cast %12 : vector<1x75x512xbf16> to vector<75x512xbf16>
    %cst_12 = arith.constant dense<0.000000e+00> : vector<6x512xf32>
    %14 = tpu.matmul %0, %13, %cst_12 {dimension_numbers = #tpu.dot_dimension_numbers<[1], [0], [0], [1], [0, 0, 1, 1], [], []>} : vector<6x75xbf16>, vector<75x512xbf16>, vector<6x512xf32> -> vector<6x512xf32>
    %15 = arith.maximumf %11, %14 : vector<6x512xf32>
    %c0_13 = arith.constant 0 : index
    %c0_14 = arith.constant 0 : index
    %16 = vector.load %arg3[%c0_13, %c0_14] : memref<6x1xf32, #tpu.memory_space<vmem>>, vector<6x1xf32>
    %17 = vector.broadcast %16 : vector<6x1xf32> to vector<6x512xf32>
    %18 = arith.addf %15, %17 : vector<6x512xf32>
    %cst_15 = arith.constant 0.000000e+00 : f32
    %19 = vector.broadcast %cst_15 : f32 to vector<6x512xf32>
    %20 = arith.maximumf %18, %19 : vector<6x512xf32>
    %c0_16 = arith.constant 0 : index
    %c0_17 = arith.constant 0 : index
    %21 = vector.load %arg4[%c0_16, %c0_17] : memref<6x512xf32, #tpu.memory_space<vmem>>, vector<6x512xf32>
    tpu.vector_store %arg4[%c0_16, %c0_17], %20 {strides = array<i32>} : memref<6x512xf32, #tpu.memory_space<vmem>>, vector<6x512xf32>,
    return
  }
  func.func @transform_0(%arg0: i32) -> (i32, i32, i32) {
    %c0_i32 = arith.constant 0 : i32
    %c0_i32_0 = arith.constant 0 : i32
    %c0_i32_1 = arith.constant 0 : i32
    return %c0_i32, %c0_i32_0, %arg0 : i32, i32, i32
  }
  func.func @transform_1(%arg0: i32) -> (i32, i32) {
    %c0_i32 = arith.constant 0 : i32
    %c0_i32_0 = arith.constant 0 : i32
    %c0_i32_1 = arith.constant 0 : i32
    return %c0_i32, %c0_i32_0 : i32, i32
  }
  func.func @transform_2(%arg0: i32) -> (i32, i32) {
    %c0_i32 = arith.constant 0 : i32
    %c0_i32_0 = arith.constant 0 : i32
    %c0_i32_1 = arith.constant 0 : i32
    return %c0_i32, %c0_i32_0 : i32, i32
  }
  func.func @transform_3(%arg0: i32) -> (i32, i32) {
    %c0_i32 = arith.constant 0 : i32
    %c0_i32_0 = arith.constant 0 : i32
    return %c0_i32, %arg0 : i32, i32
  }
}

module attributes {stable_mosaic.version = 11 : i64} {
  func.func @_conv_relu_pool_kernel(%arg0: i32, %arg1: memref<4x150x128xbf16, #tpu.memory_space<vmem>>, %arg2: memref<16x150xbf16, #tpu.memory_space<vmem>>, %arg3: memref<16x1xf32, #tpu.memory_space<vmem>>, %arg4: memref<16x128xf32, #tpu.memory_space<vmem>>) attributes {dimension_semantics = [#tpu.dimension_semantics<parallel>], iteration_bounds = array<i64: 1>, scalar_prefetch = 0 : i64, scratch_operands = 0 : i64, tpu.core_type = #tpu.core_type<tc>, window_params = [{transform_indices = @transform_0, window_bounds = array<i64: 4, 150, 128>}, {pipeline_mode = #tpu.pipeline_mode<synchronous>, transform_indices = @transform_1, window_bounds = array<i64: 16, 150>}, {pipeline_mode = #tpu.pipeline_mode<synchronous>, transform_indices = @transform_2, window_bounds = array<i64: 16, 1>}, {transform_indices = @transform_3, window_bounds = array<i64: 16, 128>}]} {
    %c0 = arith.constant 0 : index
    %c0_0 = arith.constant 0 : index
    %0 = vector.load %arg2[%c0, %c0_0] : memref<16x150xbf16, #tpu.memory_space<vmem>>, vector<16x150xbf16>
    %c0_1 = arith.constant 0 : index
    %c0_2 = arith.constant 0 : index
    %c0_3 = arith.constant 0 : index
    %1 = vector.load %arg1[%c0_1, %c0_2, %c0_3] : memref<4x150x128xbf16, #tpu.memory_space<vmem>>, vector<1x150x128xbf16>
    %2 = vector.shape_cast %1 : vector<1x150x128xbf16> to vector<150x128xbf16>
    %cst = arith.constant dense<0.000000e+00> : vector<16x128xf32>
    %3 = tpu.matmul %0, %2, %cst {dimension_numbers = #tpu.dot_dimension_numbers<[1], [0], [0], [1], [0, 0, 1, 1], [], []>} : vector<16x150xbf16>, vector<150x128xbf16>, vector<16x128xf32> -> vector<16x128xf32>
    %c1 = arith.constant 1 : index
    %c0_4 = arith.constant 0 : index
    %c0_5 = arith.constant 0 : index
    %4 = vector.load %arg1[%c1, %c0_4, %c0_5] : memref<4x150x128xbf16, #tpu.memory_space<vmem>>, vector<1x150x128xbf16>
    %5 = vector.shape_cast %4 : vector<1x150x128xbf16> to vector<150x128xbf16>
    %cst_6 = arith.constant dense<0.000000e+00> : vector<16x128xf32>
    %6 = tpu.matmul %0, %5, %cst_6 {dimension_numbers = #tpu.dot_dimension_numbers<[1], [0], [0], [1], [0, 0, 1, 1], [], []>} : vector<16x150xbf16>, vector<150x128xbf16>, vector<16x128xf32> -> vector<16x128xf32>
    %7 = arith.maximumf %3, %6 : vector<16x128xf32>
    %c2 = arith.constant 2 : index
    %c0_7 = arith.constant 0 : index
    %c0_8 = arith.constant 0 : index
    %8 = vector.load %arg1[%c2, %c0_7, %c0_8] : memref<4x150x128xbf16, #tpu.memory_space<vmem>>, vector<1x150x128xbf16>
    %9 = vector.shape_cast %8 : vector<1x150x128xbf16> to vector<150x128xbf16>
    %cst_9 = arith.constant dense<0.000000e+00> : vector<16x128xf32>
    %10 = tpu.matmul %0, %9, %cst_9 {dimension_numbers = #tpu.dot_dimension_numbers<[1], [0], [0], [1], [0, 0, 1, 1], [], []>} : vector<16x150xbf16>, vector<150x128xbf16>, vector<16x128xf32> -> vector<16x128xf32>
    %11 = arith.maximumf %7, %10 : vector<16x128xf32>
    %c3 = arith.constant 3 : index
    %c0_10 = arith.constant 0 : index
    %c0_11 = arith.constant 0 : index
    %12 = vector.load %arg1[%c3, %c0_10, %c0_11] : memref<4x150x128xbf16, #tpu.memory_space<vmem>>, vector<1x150x128xbf16>
    %13 = vector.shape_cast %12 : vector<1x150x128xbf16> to vector<150x128xbf16>
    %cst_12 = arith.constant dense<0.000000e+00> : vector<16x128xf32>
    %14 = tpu.matmul %0, %13, %cst_12 {dimension_numbers = #tpu.dot_dimension_numbers<[1], [0], [0], [1], [0, 0, 1, 1], [], []>} : vector<16x150xbf16>, vector<150x128xbf16>, vector<16x128xf32> -> vector<16x128xf32>
    %15 = arith.maximumf %11, %14 : vector<16x128xf32>
    %c0_13 = arith.constant 0 : index
    %c0_14 = arith.constant 0 : index
    %16 = vector.load %arg3[%c0_13, %c0_14] : memref<16x1xf32, #tpu.memory_space<vmem>>, vector<16x1xf32>
    %17 = vector.broadcast %16 : vector<16x1xf32> to vector<16x128xf32>
    %18 = arith.addf %15, %17 : vector<16x128xf32>
    %cst_15 = arith.constant 0.000000e+00 : f32
    %19 = vector.broadcast %cst_15 : f32 to vector<16x128xf32>
    %20 = arith.maximumf %18, %19 : vector<16x128xf32>
    %c0_16 = arith.constant 0 : index
    %c0_17 = arith.constant 0 : index
    %21 = vector.load %arg4[%c0_16, %c0_17] : memref<16x128xf32, #tpu.memory_space<vmem>>, vector<16x128xf32>
    tpu.vector_store %arg4[%c0_16, %c0_17], %20 {strides = array<i32>} : memref<16x128xf32, #tpu.memory_space<vmem>>, vector<16x128xf32>,
    return
  }
  func.func @transform_0(%arg0: i32) -> (i32, i32, i32) {
    %c0_i32 = arith.constant 0 : i32
    %c0_i32_0 = arith.constant 0 : i32
    %c0_i32_1 = arith.constant 0 : i32
    return %c0_i32, %c0_i32_0, %arg0 : i32, i32, i32
  }
  func.func @transform_1(%arg0: i32) -> (i32, i32) {
    %c0_i32 = arith.constant 0 : i32
    %c0_i32_0 = arith.constant 0 : i32
    %c0_i32_1 = arith.constant 0 : i32
    return %c0_i32, %c0_i32_0 : i32, i32
  }
  func.func @transform_2(%arg0: i32) -> (i32, i32) {
    %c0_i32 = arith.constant 0 : i32
    %c0_i32_0 = arith.constant 0 : i32
    %c0_i32_1 = arith.constant 0 : i32
    return %c0_i32, %c0_i32_0 : i32, i32
  }
  func.func @transform_3(%arg0: i32) -> (i32, i32) {
    %c0_i32 = arith.constant 0 : i32
    %c0_i32_0 = arith.constant 0 : i32
    return %c0_i32, %arg0 : i32, i32
  }
}

module attributes {stable_mosaic.version = 11 : i64} {
  func.func @_mlp_kernel(%arg0: i32, %arg1: memref<400x128xbf16, #tpu.memory_space<vmem>>, %arg2: memref<120x400xbf16, #tpu.memory_space<vmem>>, %arg3: memref<120x1xf32, #tpu.memory_space<vmem>>, %arg4: memref<84x120xbf16, #tpu.memory_space<vmem>>, %arg5: memref<84x1xf32, #tpu.memory_space<vmem>>, %arg6: memref<10x84xbf16, #tpu.memory_space<vmem>>, %arg7: memref<10x1xf32, #tpu.memory_space<vmem>>, %arg8: memref<10x128xf32, #tpu.memory_space<vmem>>) attributes {dimension_semantics = [#tpu.dimension_semantics<parallel>], iteration_bounds = array<i64: 1>, scalar_prefetch = 0 : i64, scratch_operands = 0 : i64, tpu.core_type = #tpu.core_type<tc>, window_params = [{transform_indices = @transform_0, window_bounds = array<i64: 400, 128>}, {pipeline_mode = #tpu.pipeline_mode<synchronous>, transform_indices = @transform_1, window_bounds = array<i64: 120, 400>}, {pipeline_mode = #tpu.pipeline_mode<synchronous>, transform_indices = @transform_2, window_bounds = array<i64: 120, 1>}, {pipeline_mode = #tpu.pipeline_mode<synchronous>, transform_indices = @transform_3, window_bounds = array<i64: 84, 120>}, {pipeline_mode = #tpu.pipeline_mode<synchronous>, transform_indices = @transform_4, window_bounds = array<i64: 84, 1>}, {pipeline_mode = #tpu.pipeline_mode<synchronous>, transform_indices = @transform_5, window_bounds = array<i64: 10, 84>}, {pipeline_mode = #tpu.pipeline_mode<synchronous>, transform_indices = @transform_6, window_bounds = array<i64: 10, 1>}, {transform_indices = @transform_7, window_bounds = array<i64: 10, 128>}]} {
    %c0 = arith.constant 0 : index
    %c0_0 = arith.constant 0 : index
    %0 = vector.load %arg2[%c0, %c0_0] : memref<120x400xbf16, #tpu.memory_space<vmem>>, vector<120x400xbf16>
    %c0_1 = arith.constant 0 : index
    %c0_2 = arith.constant 0 : index
    %1 = vector.load %arg1[%c0_1, %c0_2] : memref<400x128xbf16, #tpu.memory_space<vmem>>, vector<400x128xbf16>
    %cst = arith.constant dense<0.000000e+00> : vector<120x128xf32>
    %2 = tpu.matmul %0, %1, %cst {dimension_numbers = #tpu.dot_dimension_numbers<[1], [0], [0], [1], [0, 0, 1, 1], [], []>} : vector<120x400xbf16>, vector<400x128xbf16>, vector<120x128xf32> -> vector<120x128xf32>
    %c0_3 = arith.constant 0 : index
    %c0_4 = arith.constant 0 : index
    %3 = vector.load %arg3[%c0_3, %c0_4] : memref<120x1xf32, #tpu.memory_space<vmem>>, vector<120x1xf32>
    %4 = vector.broadcast %3 : vector<120x1xf32> to vector<120x128xf32>
    %5 = arith.addf %2, %4 : vector<120x128xf32>
    %cst_5 = arith.constant 0.000000e+00 : f32
    %6 = vector.broadcast %cst_5 : f32 to vector<120x128xf32>
    %7 = arith.maximumf %5, %6 : vector<120x128xf32>
    %c0_6 = arith.constant 0 : index
    %c0_7 = arith.constant 0 : index
    %8 = vector.load %arg4[%c0_6, %c0_7] : memref<84x120xbf16, #tpu.memory_space<vmem>>, vector<84x120xbf16>
    %9 = arith.truncf %7 : vector<120x128xf32> to vector<120x128xbf16>
    %cst_8 = arith.constant dense<0.000000e+00> : vector<84x128xf32>
    %10 = tpu.matmul %8, %9, %cst_8 {dimension_numbers = #tpu.dot_dimension_numbers<[1], [0], [0], [1], [0, 0, 1, 1], [], []>} : vector<84x120xbf16>, vector<120x128xbf16>, vector<84x128xf32> -> vector<84x128xf32>
    %c0_9 = arith.constant 0 : index
    %c0_10 = arith.constant 0 : index
    %11 = vector.load %arg5[%c0_9, %c0_10] : memref<84x1xf32, #tpu.memory_space<vmem>>, vector<84x1xf32>
    %12 = vector.broadcast %11 : vector<84x1xf32> to vector<84x128xf32>
    %13 = arith.addf %10, %12 : vector<84x128xf32>
    %cst_11 = arith.constant 0.000000e+00 : f32
    %14 = vector.broadcast %cst_11 : f32 to vector<84x128xf32>
    %15 = arith.maximumf %13, %14 : vector<84x128xf32>
    %c0_12 = arith.constant 0 : index
    %c0_13 = arith.constant 0 : index
    %16 = vector.load %arg6[%c0_12, %c0_13] : memref<10x84xbf16, #tpu.memory_space<vmem>>, vector<10x84xbf16>
    %17 = arith.truncf %15 : vector<84x128xf32> to vector<84x128xbf16>
    %cst_14 = arith.constant dense<0.000000e+00> : vector<10x128xf32>
    %18 = tpu.matmul %16, %17, %cst_14 {dimension_numbers = #tpu.dot_dimension_numbers<[1], [0], [0], [1], [0, 0, 1, 1], [], []>} : vector<10x84xbf16>, vector<84x128xbf16>, vector<10x128xf32> -> vector<10x128xf32>
    %c0_15 = arith.constant 0 : index
    %c0_16 = arith.constant 0 : index
    %19 = vector.load %arg7[%c0_15, %c0_16] : memref<10x1xf32, #tpu.memory_space<vmem>>, vector<10x1xf32>
    %20 = vector.broadcast %19 : vector<10x1xf32> to vector<10x128xf32>
    %21 = arith.addf %18, %20 : vector<10x128xf32>
    %c0_17 = arith.constant 0 : index
    %c0_18 = arith.constant 0 : index
    %22 = vector.load %arg8[%c0_17, %c0_18] : memref<10x128xf32, #tpu.memory_space<vmem>>, vector<10x128xf32>
    tpu.vector_store %arg8[%c0_17, %c0_18], %21 {strides = array<i32>} : memref<10x128xf32, #tpu.memory_space<vmem>>, vector<10x128xf32>,
    return
  }
  func.func @transform_0(%arg0: i32) -> (i32, i32) {
    %c0_i32 = arith.constant 0 : i32
    %c0_i32_0 = arith.constant 0 : i32
    return %c0_i32, %arg0 : i32, i32
  }
  func.func @transform_1(%arg0: i32) -> (i32, i32) {
    %c0_i32 = arith.constant 0 : i32
    %c0_i32_0 = arith.constant 0 : i32
    %c0_i32_1 = arith.constant 0 : i32
    return %c0_i32, %c0_i32_0 : i32, i32
  }
  func.func @transform_2(%arg0: i32) -> (i32, i32) {
    %c0_i32 = arith.constant 0 : i32
    %c0_i32_0 = arith.constant 0 : i32
    %c0_i32_1 = arith.constant 0 : i32
    return %c0_i32, %c0_i32_0 : i32, i32
  }
  func.func @transform_3(%arg0: i32) -> (i32, i32) {
    %c0_i32 = arith.constant 0 : i32
    %c0_i32_0 = arith.constant 0 : i32
    %c0_i32_1 = arith.constant 0 : i32
    return %c0_i32, %c0_i32_0 : i32, i32
  }
  func.func @transform_4(%arg0: i32) -> (i32, i32) {
    %c0_i32 = arith.constant 0 : i32
    %c0_i32_0 = arith.constant 0 : i32
    %c0_i32_1 = arith.constant 0 : i32
    return %c0_i32, %c0_i32_0 : i32, i32
  }
  func.func @transform_5(%arg0: i32) -> (i32, i32) {
    %c0_i32 = arith.constant 0 : i32
    %c0_i32_0 = arith.constant 0 : i32
    %c0_i32_1 = arith.constant 0 : i32
    return %c0_i32, %c0_i32_0 : i32, i32
  }
  func.func @transform_6(%arg0: i32) -> (i32, i32) {
    %c0_i32 = arith.constant 0 : i32
    %c0_i32_0 = arith.constant 0 : i32
    %c0_i32_1 = arith.constant 0 : i32
    return %c0_i32, %c0_i32_0 : i32, i32
  }
  func.func @transform_7(%arg0: i32) -> (i32, i32) {
    %c0_i32 = arith.constant 0 : i32
    %c0_i32_0 = arith.constant 0 : i32
    return %c0_i32, %arg0 : i32, i32
  }
}

</mosaic_0001>

<bundles_post_ra>
// kernel: convnet_forward.3
= control target key start
LH: loop header
LB: loop body
LE: loop exit
PB: predicated region body
PF: predicated region fallthrough
CT: control target
= control target key end

     0   :  { %vm136_vm0 = vcmask 1044480   ;;  %vm137_vm1 = vcmask 1045504   ;;  %v1172_v1 = vmov 0   ;;  %v1173_v2 = vmov 65535   ;;  %s1497_s0 = inlined_call_operand.vmem [shape: bf16[4,75,512], index: 0, kind: input, shape index: {}]   ;;  %s1498_s1 = inlined_call_operand.vmem [shape: bf16[6,75], index: 1, kind: input, shape index: {}]   ;;  %s1499_s2 = inlined_call_operand.vmem [shape: f32[6,1], index: 2, kind: input, shape index: {}]   ;;  %s1500_s3 = inlined_call_operand.vmem [shape: f32[6,512], index: 3, kind: output, shape index: {}]  }
   0x1   :  { %v1052_v0 = vld [vmem:[%s1497_s0 + $0x84] ss:$16 sps:$4 sm:$0x3f]   ;;  %184 = vmatprep.mubr.bf16.mxu0 %v1172_v1  ;;  %225 = vmatprep.mubr.bf16.mxu1 %v1172_v1  ;;  %v138_v3 = vsel %vm136_vm0, 4294967295, %v1173_v2  ;;  %v1060_v11 = vld [vmem:[%s1497_s0 + $0x6c] ss:$16 sps:$4 sm:$0xff]  }
   0x2   :  { %1051 = vset.pattern.permute.xlu0 %v1172_v1  ;;  %v1200_v4 = vsel %vm137_vm1, %v138_v3, 0  ;;  %v1054_v5 = vld [vmem:[%s1497_s0 + $0x8c] ss:$16 sps:$4 sm:$0x3f]   ;;  %v1058_v10 = vld [vmem:[%s1497_s0 + $0x64] ss:$16 sps:$4 sm:$0xff]  }
   0x3   :  { %v144_v6 = vand.u32 %v1052_v0, %v1200_v4  ;;  %v1056_v7 = vld [vmem:[%s1497_s0 + $0x80] ss:$16 sps:$4 sm:$0x3f]   ;;  %v1057_v8 = vld [vmem:[%s1497_s0 + $0x88] ss:$16 sps:$4 sm:$0x3f]   ;;  %v150_v9 = vand.u32 %v1054_v5, %v1200_v4 }
   0x4   :  { %v141_v12 = vand.u32 %v1056_v7, %v1200_v4  ;;  %v147_v13 = vand.u32 %v1057_v8, %v1200_v4  ;;  %v1062_v14 = vld [vmem:[%s1497_s0 + $0x60] ss:$16 sps:$4 sm:$0xff]   ;;  %v1063_v15 = vld [vmem:[%s1497_s0 + $0x68] ss:$16 sps:$4 sm:$0xff]   ;;  %v1064_v16 = vld [vmem:[%s1497_s0 + $0x44] ss:$16 sps:$4 sm:$0xff]  }
   0x5   :  { %158 = vmatprep.subr.bf16.mxu0 %v144_v6  ;;  %199 = vmatprep.subr.bf16.mxu1 %v150_v9  ;;  %v1066_v17 = vld [vmem:[%s1497_s0 + $0x4c] ss:$16 sps:$4 sm:$0xff]   ;;  %v1068_v18 = vld [vmem:[%s1497_s0 + $0x40] ss:$16 sps:$4 sm:$0xff]   ;;  %v1069_v19 = vld [vmem:[%s1497_s0 + $0x48] ss:$16 sps:$4 sm:$0xff]  }
   0x6   :  { %159 = vmatpush1.bf16.msra.mxu0 %v141_v12  ;;  %200 = vmatpush1.bf16.msra.mxu1 %v147_v13  ;;  %v1070_v20 = vld [vmem:[%s1497_s0 + $0x24] ss:$16 sps:$4 sm:$0xff]   ;;  %v1072_v21 = vld [vmem:[%s1497_s0 + $0x2c] ss:$16 sps:$4 sm:$0xff]   ;;  %v1074_v22 = vld [vmem:[%s1497_s0 + $0x20] ss:$16 sps:$4 sm:$0xff]  }
   0x7   :  { %160 = vmatprep.subr.bf16.mxu0 %v1058_v10  ;;  %201 = vmatprep.subr.bf16.mxu1 %v1060_v11  ;;  %v1075_v23 = vld [vmem:[%s1497_s0 + $0x28] ss:$16 sps:$4 sm:$0xff]   ;;  %v1076_v24 = vld [vmem:[%s1497_s0 + $0x4] ss:$16 sps:$4 sm:$0xff]   ;;  %v1078_v25 = vld [vmem:[%s1497_s0 + $0xc] ss:$16 sps:$4 sm:$0xff]  }
   0x8   :  { %v1084_v26 = vld [vmem:[%s1497_s0 + $0x124] ss:$16 sps:$4 sm:$0x3f]   ;;  %v1087_v27 = vld [vmem:[%s1497_s0 + $0x12c] ss:$16 sps:$4 sm:$0x3f]  }
   0x9   :  { %v1080_v28 = vld [vmem:[%s1497_s0] ss:$16 sps:$4 sm:$0xff]   ;;  %v1081_v30 = vld [vmem:[%s1497_s0 + $0x8] ss:$16 sps:$4 sm:$0xff]   ;;  %v355_v32 = vand.u32 %v1084_v26, %v1200_v4  ;;  %v361_v33 = vand.u32 %v1087_v27, %v1200_v4  ;;  %vm132_vm2 = vcmask 613376  }
   0xa   :  { %161 = vmatpush1.bf16.msra.mxu0 %v1062_v14  ;;  %202 = vmatpush1.bf16.msra.mxu1 %v1063_v15  ;;  %v1082_v29 = vld [vmem:[%s1497_s0 + $0x120] ss:$16 sps:$4 sm:$0x3f]   ;;  %v1085_v31 = vld [vmem:[%s1497_s0 + $0x128] ss:$16 sps:$4 sm:$0x3f]  }
   0xb   :  { %162 = vmatprep.subr.bf16.mxu0 %v1064_v16  ;;  %203 = vmatprep.subr.bf16.mxu1 %v1066_v17  ;;  %v1280_v34 = vld [vmem:[%s1498_s1] sm:$0x7]  ;;  %v352_v35 = vand.u32 %v1082_v29, %v1200_v4  ;;  %v358_v36 = vand.u32 %v1085_v31, %v1200_v4  ;;  %v1090_v37 = vld [vmem:[%s1497_s0 + $0x104] ss:$16 sps:$4 sm:$0xff]   ;;  %v1093_v38 = vld [vmem:[%s1497_s0 + $0x10c] ss:$16 sps:$4 sm:$0xff]  }
   0xc   :  { %v1088_v39 = vld [vmem:[%s1497_s0 + $0x100] ss:$16 sps:$4 sm:$0xff]   ;;  %v1091_v40 = vld [vmem:[%s1497_s0 + $0x108] ss:$16 sps:$4 sm:$0xff]   ;;  %v1096_v41 = vld [vmem:[%s1497_s0 + $0xe4] ss:$16 sps:$4 sm:$0xff]  }
   0xd   :  { %v1099_v42 = vld [vmem:[%s1497_s0 + $0xec] ss:$16 sps:$4 sm:$0xff]   ;;  %v1094_v43 = vld [vmem:[%s1497_s0 + $0xe0] ss:$16 sps:$4 sm:$0xff]   ;;  %v1097_v44 = vld [vmem:[%s1497_s0 + $0xe8] ss:$16 sps:$4 sm:$0xff]  }
   0xe   :  { %163 = vmatpush1.bf16.msra.mxu0 %v1068_v18  ;;  %204 = vmatpush1.bf16.msra.mxu1 %v1069_v19  ;;  %v1102_v45 = vld [vmem:[%s1497_s0 + $0xc4] ss:$16 sps:$4 sm:$0xff]   ;;  %v1105_v46 = vld [vmem:[%s1497_s0 + $0xcc] ss:$16 sps:$4 sm:$0xff]   ;;  %v1100_v47 = vld [vmem:[%s1497_s0 + $0xc0] ss:$16 sps:$4 sm:$0xff]  }
   0xf   :  { %164 = vmatprep.subr.bf16.mxu0 %v1070_v20  ;;  %205 = vmatprep.subr.bf16.mxu1 %v1072_v21  ;;  %v1103_v48 = vld [vmem:[%s1497_s0 + $0xc8] ss:$16 sps:$4 sm:$0xff]   ;;  %v1108_v49 = vld [vmem:[%s1497_s0 + $0xa4] ss:$16 sps:$4 sm:$0xff]   ;;  %v1111_v50 = vld [vmem:[%s1497_s0 + $0xac] ss:$16 sps:$4 sm:$0xff]  }
  0x10   :  { %v1114_v51 = vld [vmem:[%s1497_s0 + $0x1c4] ss:$16 sps:$4 sm:$0x3f]   ;;  %v1117_v52 = vld [vmem:[%s1497_s0 + $0x1cc] ss:$16 sps:$4 sm:$0x3f]  }
  0x11   :  { %v1106_v53 = vld [vmem:[%s1497_s0 + $0xa0] ss:$16 sps:$4 sm:$0xff]   ;;  %v1109_v55 = vld [vmem:[%s1497_s0 + $0xa8] ss:$16 sps:$4 sm:$0xff]   ;;  %v570_v57 = vand.u32 %v1114_v51, %v1200_v4  ;;  %v576_v58 = vand.u32 %v1117_v52, %v1200_v4  ;;  %v1120_v61 = vld [vmem:[%s1497_s0 + $0x1a4] ss:$16 sps:$4 sm:$0xff]  }
  0x12   :  { %165 = vmatpush1.bf16.msra.mxu0 %v1074_v22  ;;  %206 = vmatpush1.bf16.msra.mxu1 %v1075_v23  ;;  %v1112_v54 = vld [vmem:[%s1497_s0 + $0x1c0] ss:$16 sps:$4 sm:$0x3f]   ;;  %v1115_v56 = vld [vmem:[%s1497_s0 + $0x1c8] ss:$16 sps:$4 sm:$0x3f]  }
  0x13   :  { %166 = vmatprep.subr.bf16.mxu0 %v1076_v24  ;;  %207 = vmatprep.subr.bf16.mxu1 %v1078_v25  ;;  %v567_v59 = vand.u32 %v1112_v54, %v1200_v4  ;;  %v573_v60 = vand.u32 %v1115_v56, %v1200_v4  ;;  %v1123_v62 = vld [vmem:[%s1497_s0 + $0x1ac] ss:$16 sps:$4 sm:$0xff]   ;;  %v1118_v63 = vld [vmem:[%s1497_s0 + $0x1a0] ss:$16 sps:$4 sm:$0xff]   ;;  %v1121_v0 = vld [vmem:[%s1497_s0 + $0x1a8] ss:$16 sps:$4 sm:$0xff]  }
  0x14   :  { %v1126_v2 = vld [vmem:[%s1497_s0 + $0x184] ss:$16 sps:$4 sm:$0xff]   ;;  %v1129_v3 = vld [vmem:[%s1497_s0 + $0x18c] ss:$16 sps:$4 sm:$0xff]   ;;  %v1124_v5 = vld [vmem:[%s1497_s0 + $0x180] ss:$16 sps:$4 sm:$0xff]  }
  0x15   :  { %v1127_v6 = vld [vmem:[%s1497_s0 + $0x188] ss:$16 sps:$4 sm:$0xff]   ;;  %v1132_v7 = vld [vmem:[%s1497_s0 + $0x164] ss:$16 sps:$4 sm:$0xff]   ;;  %v1135_v8 = vld [vmem:[%s1497_s0 + $0x16c] ss:$16 sps:$4 sm:$0xff]  }
  0x16   :  { %167 = vmatpush1.bf16.msra.mxu0 %v1080_v28  ;;  %208 = vmatpush1.bf16.msra.mxu1 %v1081_v30  ;;  %v1130_v9 = vld [vmem:[%s1497_s0 + $0x160] ss:$16 sps:$4 sm:$0xff]   ;;  %v1133_v10 = vld [vmem:[%s1497_s0 + $0x168] ss:$16 sps:$4 sm:$0xff]   ;;  %v1138_v11 = vld [vmem:[%s1497_s0 + $0x144] ss:$16 sps:$4 sm:$0xff]  }
  0x17   :  { %369 = vmatprep.subr.bf16.mxu0 %v355_v32  ;;  %410 = vmatprep.subr.bf16.mxu1 %v361_v33  ;;  %v1141_v12 = vld [vmem:[%s1497_s0 + $0x14c] ss:$16 sps:$4 sm:$0xff]   ;;  %v879_v13 = vld [vmem:[%s1499_s2] sm:$0x3f]  ;;  %v1139_v17 = vld [vmem:[%s1497_s0 + $0x148] ss:$16 sps:$4 sm:$0xff]  }
  0x18   :  { %v1144_v14 = vld [vmem:[%s1497_s0 + $0x264] ss:$16 sps:$4 sm:$0x3f]   ;;  %v1147_v15 = vld [vmem:[%s1497_s0 + $0x26c] ss:$16 sps:$4 sm:$0x3f]   ;;  %882 = vperm.xlu0 %1051, %v879_v13  }
  0x19   :  { %921 = vmatmul.mubr.msk.bf16.vlgmr.msra.gmra.mxu0 %vm132_vm2, %v1280_v34  ;;  %922 = vmatmul.mubr.msk.bf16.vlgmr.msra.gmra.mxu1 %vm132_vm2, %v1280_v34  ;;  %v1136_v16 = vld [vmem:[%s1497_s0 + $0x140] ss:$16 sps:$4 sm:$0xff]   ;;  %v1145_v19 = vld [vmem:[%s1497_s0 + $0x268] ss:$16 sps:$4 sm:$0x3f]   ;;  %v785_v20 = vand.u32 %v1144_v14, %v1200_v4  ;;  %v791_v21 = vand.u32 %v1147_v15, %v1200_v4 }
  0x1a   :  { %370 = vmatpush1.bf16.msra.mxu0 %v352_v35  ;;  %411 = vmatpush1.bf16.msra.mxu1 %v358_v36  ;;  %v1142_v18 = vld [vmem:[%s1497_s0 + $0x260] ss:$16 sps:$4 sm:$0x3f]   ;;  %v788_v23 = vand.u32 %v1145_v19, %v1200_v4  ;;  %v1150_v24 = vld [vmem:[%s1497_s0 + $0x244] ss:$16 sps:$4 sm:$0xff]  }
  0x1b   :  { %371 = vmatprep.subr.bf16.mxu0 %v1090_v37  ;;  %412 = vmatprep.subr.bf16.mxu1 %v1093_v38  ;;  %v782_v22 = vand.u32 %v1142_v18, %v1200_v4  ;;  %v1153_v25 = vld [vmem:[%s1497_s0 + $0x24c] ss:$16 sps:$4 sm:$0xff]   ;;  %v1148_v4 = vld [vmem:[%s1497_s0 + $0x240] ss:$16 sps:$4 sm:$0xff]   ;;  %v1151_v26 = vld [vmem:[%s1497_s0 + $0x248] ss:$16 sps:$4 sm:$0xff]  }
  0x1c   :  { %395 = vmatprep.mubr.bf16.mxu0 %v1172_v1  ;;  %436 = vmatprep.mubr.bf16.mxu1 %v1172_v1  ;;  %v1156_v27 = vld [vmem:[%s1497_s0 + $0x224] ss:$16 sps:$4 sm:$0xff]   ;;  %v1159_v28 = vld [vmem:[%s1497_s0 + $0x22c] ss:$16 sps:$4 sm:$0xff]   ;;  %v1154_v29 = vld [vmem:[%s1497_s0 + $0x220] ss:$16 sps:$4 sm:$0xff]  }
  0x1d   :  { %v1157_v30 = vld [vmem:[%s1497_s0 + $0x228] ss:$16 sps:$4 sm:$0xff]   ;;  %v1162_v31 = vld [vmem:[%s1497_s0 + $0x204] ss:$16 sps:$4 sm:$0xff]   ;;  %v1160_v32 = vld [vmem:[%s1497_s0 + $0x200] ss:$16 sps:$4 sm:$0xff]  }
  0x1e   :  { %372 = vmatpush1.bf16.msra.mxu0 %v1088_v39  ;;  %413 = vmatpush1.bf16.msra.mxu1 %v1091_v40  ;;  %v1163_v33 = vld [vmem:[%s1497_s0 + $0x208] ss:$16 sps:$4 sm:$0xff]   ;;  %v1168_v35 = vld [vmem:[%s1497_s0 + $0x1e4] ss:$16 sps:$4 sm:$0xff]   ;;  %v1171_v36 = vld [vmem:[%s1497_s0 + $0x1ec] ss:$16 sps:$4 sm:$0xff]  }
  0x1f   :  { %373 = vmatprep.subr.bf16.mxu0 %v1096_v41  ;;  %414 = vmatprep.subr.bf16.mxu1 %v1099_v42  ;;  %v1166_v37 = vld [vmem:[%s1497_s0 + $0x1e0] ss:$16 sps:$4 sm:$0xff]   ;;  %v1169_v38 = vld [vmem:[%s1497_s0 + $0x1e8] ss:$16 sps:$4 sm:$0xff]  }
  0x22   :  { %374 = vmatpush1.bf16.msra.mxu0 %v1094_v43  ;;  %415 = vmatpush1.bf16.msra.mxu1 %v1097_v44 }
  0x23   :  { %375 = vmatprep.subr.bf16.mxu0 %v1102_v45  ;;  %416 = vmatprep.subr.bf16.mxu1 %v1105_v46 }
  0x26   :  { %376 = vmatpush1.bf16.msra.mxu0 %v1100_v47  ;;  %417 = vmatpush1.bf16.msra.mxu1 %v1103_v48 }
  0x27   :  { %377 = vmatprep.subr.bf16.mxu0 %v1108_v49  ;;  %418 = vmatprep.subr.bf16.mxu1 %v1111_v50 }
  0x2a   :  { %378 = vmatpush1.bf16.msra.mxu0 %v1106_v53  ;;  %419 = vmatpush1.bf16.msra.mxu1 %v1109_v55 }
  0x2b   :  { %584 = vmatprep.subr.bf16.mxu0 %v570_v57  ;;  %625 = vmatprep.subr.bf16.mxu1 %v576_v58 }
  0x2d   :  { %963 = vmatmul.mubr.msk.bf16.vlgmr.msra.gmra.mxu0 %vm132_vm2, %v1280_v34  ;;  %964 = vmatmul.mubr.msk.bf16.vlgmr.msra.gmra.mxu1 %vm132_vm2, %v1280_v34 }
  0x2e   :  { %585 = vmatpush1.bf16.msra.mxu0 %v567_v59  ;;  %626 = vmatpush1.bf16.msra.mxu1 %v573_v60 }
  0x2f   :  { %586 = vmatprep.subr.bf16.mxu0 %v1120_v61  ;;  %627 = vmatprep.subr.bf16.mxu1 %v1123_v62 }
  0x30   :  { %610 = vmatprep.mubr.bf16.mxu0 %v1172_v1  ;;  %651 = vmatprep.mubr.bf16.mxu1 %v1172_v1 }
  0x32   :  { %587 = vmatpush1.bf16.msra.mxu0 %v1118_v63  ;;  %628 = vmatpush1.bf16.msra.mxu1 %v1121_v0 }
  0x33   :  { %588 = vmatprep.subr.bf16.mxu0 %v1126_v2  ;;  %629 = vmatprep.subr.bf16.mxu1 %v1129_v3 }
  0x36   :  { %589 = vmatpush1.bf16.msra.mxu0 %v1124_v5  ;;  %630 = vmatpush1.bf16.msra.mxu1 %v1127_v6 }
  0x37   :  { %590 = vmatprep.subr.bf16.mxu0 %v1132_v7  ;;  %631 = vmatprep.subr.bf16.mxu1 %v1135_v8 }
  0x3a   :  { %591 = vmatpush1.bf16.msra.mxu0 %v1130_v9  ;;  %632 = vmatpush1.bf16.msra.mxu1 %v1133_v10 }
  0x3b   :  { %592 = vmatprep.subr.bf16.mxu0 %v1138_v11  ;;  %633 = vmatprep.subr.bf16.mxu1 %v1141_v12 }
  0x3e   :  { %593 = vmatpush1.bf16.msra.mxu0 %v1136_v16  ;;  %634 = vmatpush1.bf16.msra.mxu1 %v1139_v17 }
  0x3f   :  { %799 = vmatprep.subr.bf16.mxu0 %v785_v20  ;;  %840 = vmatprep.subr.bf16.mxu1 %v791_v21 }
  0x41   :  { %1005 = vmatmul.mubr.msk.bf16.vlgmr.msra.gmra.mxu0 %vm132_vm2, %v1280_v34  ;;  %1006 = vmatmul.mubr.msk.bf16.vlgmr.msra.gmra.mxu1 %vm132_vm2, %v1280_v34 }
  0x42   :  { %800 = vmatpush1.bf16.msra.mxu0 %v782_v22  ;;  %841 = vmatpush1.bf16.msra.mxu1 %v788_v23 }
  0x43   :  { %801 = vmatprep.subr.bf16.mxu0 %v1150_v24  ;;  %842 = vmatprep.subr.bf16.mxu1 %v1153_v25 }
  0x44   :  { %825 = vmatprep.mubr.bf16.mxu0 %v1172_v1  ;;  %866 = vmatprep.mubr.bf16.mxu1 %v1172_v1  ;;  %v1165_v1 = vld [vmem:[%s1497_s0 + $0x20c] ss:$16 sps:$4 sm:$0xff]  }
  0x46   :  { %802 = vmatpush1.bf16.msra.mxu0 %v1148_v4  ;;  %843 = vmatpush1.bf16.msra.mxu1 %v1151_v26 }
  0x47   :  { %803 = vmatprep.subr.bf16.mxu0 %v1156_v27  ;;  %844 = vmatprep.subr.bf16.mxu1 %v1159_v28 }
  0x4a   :  { %804 = vmatpush1.bf16.msra.mxu0 %v1154_v29  ;;  %845 = vmatpush1.bf16.msra.mxu1 %v1157_v30 }
  0x4b   :  { %805 = vmatprep.subr.bf16.mxu0 %v1162_v31  ;;  %846 = vmatprep.subr.bf16.mxu1 %v1165_v1 }
  0x4e   :  { %806 = vmatpush1.bf16.msra.mxu0 %v1160_v32  ;;  %847 = vmatpush1.bf16.msra.mxu1 %v1163_v33 }
  0x4f   :  { %807 = vmatprep.subr.bf16.mxu0 %v1168_v35  ;;  %848 = vmatprep.subr.bf16.mxu1 %v1171_v36 }
  0x52   :  { %808 = vmatpush1.bf16.msra.mxu0 %v1166_v37  ;;  %849 = vmatpush1.bf16.msra.mxu1 %v1169_v38 }
  0x55   :  { %1047 = vmatmul.mubr.msk.bf16.vlgmr.msra.gmra.mxu0 %vm132_vm2, %v1280_v34  ;;  %1048 = vmatmul.mubr.msk.bf16.vlgmr.msra.gmra.mxu1 %vm132_vm2, %v1280_v34 }
  0x93   :  { %v883_v6 = vpop.permute.xlu0 %882 }
  0xd9   :  { %v186_v39 = vpop.f32.mrf.mxu0  ;;  %v227_v40 = vpop.f32.mrf.mxu1 }
  0xdb   :  { %v188_v41 = vpop.f32.mrf.mxu0  ;;  %v229_v42 = vpop.f32.mrf.mxu1 }
  0xdd   :  { %v190_v43 = vpop.f32.mrf.mxu0  ;;  %v231_v44 = vpop.f32.mrf.mxu1 }
  0xdf   :  { %v191_v45 = vpop.f32.mrf.mxu0  ;;  %v232_v46 = vpop.f32.mrf.mxu1 }
  0xed   :  { %v397_v47 = vpop.f32.mrf.mxu0  ;;  %v438_v48 = vpop.f32.mrf.mxu1 }
  0xee   :  { %v445_v62 = vmax.f32 %v186_v39, %v397_v47  ;;  %v447_v63 = vmax.f32 %v227_v40, %v438_v48 }
  0xef   :  { %v399_v49 = vpop.f32.mrf.mxu0  ;;  %v440_v50 = vpop.f32.mrf.mxu1 }
  0xf0   :  { %v446_v0 = vmax.f32 %v188_v41, %v399_v49  ;;  %v448_v2 = vmax.f32 %v229_v42, %v440_v50 }
  0xf1   :  { %v401_v51 = vpop.f32.mrf.mxu0  ;;  %v442_v52 = vpop.f32.mrf.mxu1 }
  0xf3   :  { %v402_v53 = vpop.f32.mrf.mxu0  ;;  %v443_v54 = vpop.f32.mrf.mxu1 }
 0x101   :  { %v612_v55 = vpop.f32.mrf.mxu0  ;;  %v653_v56 = vpop.f32.mrf.mxu1 }
 0x102   :  { %v660_v3 = vmax.f32 %v445_v62, %v612_v55  ;;  %v662_v5 = vmax.f32 %v447_v63, %v653_v56 }
 0x103   :  { %v614_v57 = vpop.f32.mrf.mxu0  ;;  %v655_v34 = vpop.f32.mrf.mxu1 }
 0x104   :  { %v661_v9 = vmax.f32 %v446_v0, %v614_v57  ;;  %v663_v10 = vmax.f32 %v448_v2, %v655_v34 }
 0x105   :  { %v616_v58 = vpop.f32.mrf.mxu0  ;;  %v657_v59 = vpop.f32.mrf.mxu1 }
 0x107   :  { %v617_v60 = vpop.f32.mrf.mxu0  ;;  %v658_v61 = vpop.f32.mrf.mxu1 }
 0x115   :  { %v827_v7 = vpop.f32.mrf.mxu0  ;;  %v868_v8 = vpop.f32.mrf.mxu1 }
 0x116   :  { %v875_v11 = vmax.f32 %v660_v3, %v827_v7  ;;  %v877_v12 = vmax.f32 %v662_v5, %v868_v8 }
 0x117   :  { %v829_v13 = vpop.f32.mrf.mxu0  ;;  %v870_v14 = vpop.f32.mrf.mxu1 }
 0x118   :  { %v885_v15 = vadd.f32 %v883_v6, %v875_v11  ;;  %v887_v16 = vadd.f32 %v883_v6, %v877_v12  ;;  %v876_v17 = vmax.f32 %v661_v9, %v829_v13  ;;  %v878_v18 = vmax.f32 %v663_v10, %v870_v14 }
 0x119   :  { %v831_v19 = vpop.f32.mrf.mxu0  ;;  %v872_v20 = vpop.f32.mrf.mxu1 }
 0x11a   :  { %v889_v21 = vmax.f32 %v885_v15, 0.0  ;;  %v891_v22 = vmax.f32 %v887_v16, 0.0  ;;  %v886_v23 = vadd.f32 %v883_v6, %v876_v17  ;;  %v888_v24 = vadd.f32 %v883_v6, %v878_v18 }
 0x11b   :  { %v832_v25 = vpop.f32.mrf.mxu0  ;;  %v873_v4 = vpop.f32.mrf.mxu1 }
 0x11c   :  { %893 = vst [vmem:[%s1500_s3] sm:$0x3f] %v889_v21  ;;  %895 = vst [vmem:[%s1500_s3 + $0x10] sm:$0x3f] %v891_v22  ;;  %v890_v26 = vmax.f32 %v886_v23, 0.0  ;;  %v892_v27 = vmax.f32 %v888_v24, 0.0 }
 0x11e   :  { %894 = vst [vmem:[%s1500_s3 + $0x8] sm:$0x3f] %v890_v26  ;;  %896 = vst [vmem:[%s1500_s3 + $0x18] sm:$0x3f] %v892_v27 }

// kernel: convnet_forward.4
= control target key start
LH: loop header
LB: loop body
LE: loop exit
PB: predicated region body
PF: predicated region fallthrough
CT: control target
= control target key end

     0   :  { %v690_v0 = vmov 0   ;;  %vm102_vm0 = vcmask 179200   ;;  %vm106_vm1 = vcmask 1042432   ;;  %s904_s0 = inlined_call_operand.vmem [shape: bf16[4,150,128], index: 0, kind: input, shape index: {}]   ;;  %s905_s1 = inlined_call_operand.vmem [shape: bf16[16,150], index: 1, kind: input, shape index: {}]   ;;  %s906_s2 = inlined_call_operand.vmem [shape: f32[16,1], index: 2, kind: input, shape index: {}]   ;;  %s907_s3 = inlined_call_operand.vmem [shape: f32[16,128], index: 3, kind: output, shape index: {}]  }
   0x1   :  { %110 = vmatprep.subr.bf16.mxu0 %v690_v0  ;;  %231 = vmatprep.subr.bf16.mxu1 %v690_v0  ;;  %v647_v1 = vld [vmem:[%s904_s0 + $0x38] sm:$0xff]   ;;  %v648_v2 = vld [vmem:[%s904_s0 + $0x84] sm:$0xff]   ;;  %v649_v3 = vld [vmem:[%s904_s0 + $0x30] sm:$0xff]  }
   0x2   :  { %646 = vset.pattern.permute.xlu0 %v690_v0  ;;  %111 = vmatpush1.bf16.msra.mxu0 %v647_v1  ;;  %v650_v4 = vld [vmem:[%s904_s0 + $0x7c] sm:$0xff]   ;;  %v651_v5 = vld [vmem:[%s904_s0 + $0x28] sm:$0xff]   ;;  %v652_v6 = vld [vmem:[%s904_s0 + $0x74] sm:$0xff]  }
   0x3   :  { %232 = vmatpush1.bf16.msra.mxu1 %v648_v2  ;;  %112 = vmatprep.subr.bf16.mxu0 %v690_v0  ;;  %v653_v7 = vld [vmem:[%s904_s0 + $0x20] sm:$0xff]   ;;  %v654_v8 = vld [vmem:[%s904_s0 + $0x6c] sm:$0xff]   ;;  %v655_v9 = vld [vmem:[%s904_s0 + $0x18] sm:$0xff]  }
   0x4   :  { %233 = vmatprep.subr.bf16.mxu1 %v690_v0  ;;  %v656_v10 = vld [vmem:[%s904_s0 + $0x64] sm:$0xff]   ;;  %v657_v11 = vld [vmem:[%s904_s0 + $0x10] sm:$0xff]   ;;  %v658_v12 = vld [vmem:[%s904_s0 + $0x5c] sm:$0xff]  }
   0x5   :  { %v667_v13 = vld [vmem:[%s905_s1 + $0x4] ss:$8 sps:$4 sm:$0xff]   ;;  %v660_v15 = vld [vmem:[%s904_s0 + $0x54] sm:$0xff]   ;;  %v663_v16 = vld [vmem:[%s904_s0 + $0x48] ss:$0 sps:$4 sm:$0x77]  }
   0x6   :  { %113 = vmatpush1.bf16.msra.mxu0 %v649_v3  ;;  %v659_v14 = vld [vmem:[%s904_s0 + $0x8] sm:$0xff]   ;;  %554 = vmatprep.mubr.msk.bf16.mxu0 %vm102_vm0, %v667_v13  ;;  %v661_v17 = vld [vmem:[%s904_s0] sm:$0xff]   ;;  %v664_v18 = vld [vmem:[%s904_s0 + $0x94] ss:$0 sps:$4 sm:$0x77]   ;;  %v108_v20 = vsel %vm106_vm1, %v663_v16, 0 }
   0x7   :  { %234 = vmatpush1.bf16.msra.mxu1 %v650_v4  ;;  %114 = vmatprep.subr.bf16.mxu0 %v690_v0  ;;  %v662_v19 = vld [vmem:[%s904_s0 + $0x4c] sm:$0xff]   ;;  %v229_v21 = vsel %vm106_vm1, %v664_v18, 0  ;;  %v665_v22 = vld [vmem:[%s904_s0 + $0x40] sm:$0xff]   ;;  %v673_v30 = vld [vmem:[%s904_s0 + $0x114] sm:$0xff]  }
   0x8   :  { %235 = vmatprep.subr.bf16.mxu1 %v690_v0  ;;  %584 = vmatprep.mubr.msk.bf16.mxu1 %vm102_vm0, %v667_v13  ;;  %v666_v23 = vld [vmem:[%s904_s0 + $0x8c] sm:$0xff]   ;;  %v802_v24 = vld [vmem:[%s905_s1] ss:$8 sps:$4 sm:$0xff]   ;;  %v676_v33 = vld [vmem:[%s904_s0 + $0xb8] sm:$0xff]  }
   0x9   :  { %v670_v25 = vld [vmem:[%s904_s0 + $0xd0] sm:$0xff]   ;;  %v671_v26 = vld [vmem:[%s904_s0 + $0x11c] sm:$0xff]   ;;  %v672_v28 = vld [vmem:[%s904_s0 + $0xc8] sm:$0xff]  }
   0xa   :  { %115 = vmatpush1.bf16.msra.mxu0 %v651_v5  ;;  %v520_v27 = vld [vmem:[%s906_s2] sm:$0xff]  ;;  %v521_v29 = vld [vmem:[%s906_s2 + $0x8] sm:$0xff]  ;;  %v678_v35 = vld [vmem:[%s904_s0 + $0xb0] sm:$0xff]  }
   0xb   :  { %236 = vmatpush1.bf16.msra.mxu1 %v652_v6  ;;  %116 = vmatprep.subr.bf16.mxu0 %v690_v0  ;;  %v674_v31 = vld [vmem:[%s904_s0 + $0xc0] sm:$0xff]   ;;  %v675_v32 = vld [vmem:[%s904_s0 + $0x10c] sm:$0xff]   ;;  %v681_v38 = vld [vmem:[%s904_s0 + $0xf4] sm:$0xff]  }
   0xc   :  { %237 = vmatprep.subr.bf16.mxu1 %v690_v0  ;;  %524 = vperm.xlu0 %646, %v520_v27   ;;  %v677_v34 = vld [vmem:[%s904_s0 + $0x104] sm:$0xff]   ;;  %v679_v36 = vld [vmem:[%s904_s0 + $0xfc] sm:$0xff]   ;;  %v683_v40 = vld [vmem:[%s904_s0 + $0xec] sm:$0xff]  }
   0xd   :  { %v680_v37 = vld [vmem:[%s904_s0 + $0xa8] sm:$0xff]   ;;  %v682_v39 = vld [vmem:[%s904_s0 + $0xa0] sm:$0xff]   ;;  %v684_v41 = vld [vmem:[%s904_s0 + $0x98] sm:$0xff]  }
   0xe   :  { %117 = vmatpush1.bf16.msra.mxu0 %v653_v7  ;;  %v685_v42 = vld [vmem:[%s904_s0 + $0xe4] sm:$0xff]   ;;  %v686_v43 = vld [vmem:[%s904_s0 + $0xe0] ss:$0 sps:$4 sm:$0x77]   ;;  %v688_v47 = vld [vmem:[%s904_s0 + $0xd8] sm:$0xff]  }
   0xf   :  { %238 = vmatpush1.bf16.msra.mxu1 %v654_v8  ;;  %118 = vmatprep.subr.bf16.mxu0 %v690_v0  ;;  %v687_v44 = vld [vmem:[%s904_s0 + $0x12c] ss:$0 sps:$4 sm:$0x77]   ;;  %v352_v45 = vsel %vm106_vm1, %v686_v43, 0  ;;  %v689_v48 = vld [vmem:[%s904_s0 + $0x124] sm:$0xff]  }
  0x10   :  { %239 = vmatprep.subr.bf16.mxu1 %v690_v0  ;;  %529 = vperm.xlu0 %646, %v521_v29   ;;  %v475_v46 = vsel %vm106_vm1, %v687_v44, 0 }
  0x12   :  { %119 = vmatpush1.bf16.msra.mxu0 %v655_v9 }
  0x13   :  { %240 = vmatpush1.bf16.msra.mxu1 %v656_v10  ;;  %120 = vmatprep.subr.bf16.mxu0 %v690_v0 }
  0x14   :  { %241 = vmatprep.subr.bf16.mxu1 %v690_v0 }
  0x16   :  { %121 = vmatpush1.bf16.msra.mxu0 %v657_v11 }
  0x17   :  { %242 = vmatpush1.bf16.msra.mxu1 %v658_v12  ;;  %122 = vmatprep.subr.bf16.mxu0 %v690_v0 }
  0x18   :  { %243 = vmatprep.subr.bf16.mxu1 %v690_v0 }
  0x1a   :  { %123 = vmatpush1.bf16.msra.mxu0 %v659_v14 }
  0x1b   :  { %244 = vmatpush1.bf16.msra.mxu1 %v660_v15  ;;  %124 = vmatprep.subr.bf16.mxu0 %v690_v0 }
  0x1c   :  { %245 = vmatprep.subr.bf16.mxu1 %v690_v0 }
  0x1e   :  { %125 = vmatpush1.bf16.msra.mxu0 %v661_v17 }
  0x1f   :  { %246 = vmatpush1.bf16.msra.mxu1 %v662_v19  ;;  %138 = vmatprep.subr.bf16.mxu0 %v690_v0 }
  0x20   :  { %259 = vmatprep.subr.bf16.mxu1 %v690_v0 }
  0x22   :  { %139 = vmatpush2.bf16.msra.mxu0 %v108_v20 }
  0x23   :  { %260 = vmatpush2.bf16.msra.mxu1 %v229_v21  ;;  %140 = vmatprep.subr.bf16.mxu0 %v690_v0 }
  0x24   :  { %261 = vmatprep.subr.bf16.mxu1 %v690_v0 }
  0x26   :  { %141 = vmatpush2.bf16.msra.mxu0 %v665_v22 }
  0x27   :  { %262 = vmatpush2.bf16.msra.mxu1 %v666_v23  ;;  %354 = vmatprep.subr.bf16.mxu0 %v690_v0 }
  0x28   :  { %477 = vmatprep.subr.bf16.mxu1 %v690_v0 }
  0x29   :  { %143 = vmatmul.mubr.bf16.vlgmr.msra.gmra.mxu0 %v802_v24 }
  0x2a   :  { %264 = vmatmul.mubr.bf16.vlgmr.msra.gmra.mxu1 %v802_v24  ;;  %355 = vmatpush1.bf16.msra.mxu0 %v670_v25 }
  0x2b   :  { %478 = vmatpush1.bf16.msra.mxu1 %v671_v26  ;;  %356 = vmatprep.subr.bf16.mxu0 %v690_v0 }
  0x2c   :  { %479 = vmatprep.subr.bf16.mxu1 %v690_v0  ;;  %614 = vmatprep.mubr.msk.bf16.mxu0 %vm102_vm0, %v667_v13 }
  0x2d   :  { %644 = vmatprep.mubr.msk.bf16.mxu1 %vm102_vm0, %v667_v13 }
  0x2e   :  { %357 = vmatpush1.bf16.msra.mxu0 %v672_v28 }
  0x2f   :  { %480 = vmatpush1.bf16.msra.mxu1 %v673_v30  ;;  %358 = vmatprep.subr.bf16.mxu0 %v690_v0 }
  0x30   :  { %481 = vmatprep.subr.bf16.mxu1 %v690_v0 }
  0x32   :  { %359 = vmatpush1.bf16.msra.mxu0 %v674_v31 }
  0x33   :  { %482 = vmatpush1.bf16.msra.mxu1 %v675_v32  ;;  %360 = vmatprep.subr.bf16.mxu0 %v690_v0 }
  0x34   :  { %483 = vmatprep.subr.bf16.mxu1 %v690_v0 }
  0x36   :  { %361 = vmatpush1.bf16.msra.mxu0 %v676_v33 }
  0x37   :  { %484 = vmatpush1.bf16.msra.mxu1 %v677_v34  ;;  %362 = vmatprep.subr.bf16.mxu0 %v690_v0 }
  0x38   :  { %485 = vmatprep.subr.bf16.mxu1 %v690_v0 }
  0x3a   :  { %363 = vmatpush1.bf16.msra.mxu0 %v678_v35 }
  0x3b   :  { %486 = vmatpush1.bf16.msra.mxu1 %v679_v36  ;;  %364 = vmatprep.subr.bf16.mxu0 %v690_v0 }
  0x3c   :  { %487 = vmatprep.subr.bf16.mxu1 %v690_v0 }
  0x3e   :  { %365 = vmatpush1.bf16.msra.mxu0 %v680_v37 }
  0x3f   :  { %488 = vmatpush1.bf16.msra.mxu1 %v681_v38  ;;  %366 = vmatprep.subr.bf16.mxu0 %v690_v0 }
  0x40   :  { %489 = vmatprep.subr.bf16.mxu1 %v690_v0 }
  0x42   :  { %367 = vmatpush1.bf16.msra.mxu0 %v682_v39 }
  0x43   :  { %490 = vmatpush1.bf16.msra.mxu1 %v683_v40  ;;  %368 = vmatprep.subr.bf16.mxu0 %v690_v0 }
  0x44   :  { %491 = vmatprep.subr.bf16.mxu1 %v690_v0 }
  0x46   :  { %369 = vmatpush1.bf16.msra.mxu0 %v684_v41 }
  0x47   :  { %492 = vmatpush1.bf16.msra.mxu1 %v685_v42  ;;  %382 = vmatprep.subr.bf16.mxu0 %v690_v0 }
  0x48   :  { %505 = vmatprep.subr.bf16.mxu1 %v690_v0 }
  0x4a   :  { %383 = vmatpush2.bf16.msra.mxu0 %v352_v45 }
  0x4b   :  { %506 = vmatpush2.bf16.msra.mxu1 %v475_v46  ;;  %384 = vmatprep.subr.bf16.mxu0 %v690_v0 }
  0x4c   :  { %507 = vmatprep.subr.bf16.mxu1 %v690_v0 }
  0x4e   :  { %385 = vmatpush2.bf16.msra.mxu0 %v688_v47 }
  0x4f   :  { %508 = vmatpush2.bf16.msra.mxu1 %v689_v48 }
  0x51   :  { %387 = vmatmul.mubr.bf16.vlgmr.msra.gmra.mxu0 %v802_v24 }
  0x52   :  { %510 = vmatmul.mubr.bf16.vlgmr.msra.gmra.mxu1 %v802_v24 }
  0x87   :  { %v525_v61 = vpop.permute.xlu0 %524 }
  0x8b   :  { %v530_v10 = vpop.permute.xlu0 %529 }
  0xe9   :  { %v144_v49 = vpop.f32.mrf.mxu0 }
  0xea   :  { %v265_v50 = vpop.f32.mrf.mxu1 }
  0xeb   :  { %v146_v51 = vpop.f32.mrf.mxu0  ;;  %v272_v57 = vmax.f32 %v144_v49, %v265_v50 }
  0xec   :  { %v267_v52 = vpop.f32.mrf.mxu1 }
  0xed   :  { %v147_v53 = vpop.f32.mrf.mxu0 }
  0xee   :  { %v268_v54 = vpop.f32.mrf.mxu1 }
  0xef   :  { %v149_v55 = vpop.f32.mrf.mxu0  ;;  %v273_v63 = vmax.f32 %v147_v53, %v268_v54 }
  0xf0   :  { %v270_v56 = vpop.f32.mrf.mxu1 }
 0x111   :  { %v388_v58 = vpop.f32.mrf.mxu0 }
 0x112   :  { %v395_v59 = vmax.f32 %v272_v57, %v388_v58  ;;  %v511_v60 = vpop.f32.mrf.mxu1 }
 0x113   :  { %v390_v62 = vpop.f32.mrf.mxu0 }
 0x114   :  { %v518_v0 = vmax.f32 %v395_v59, %v511_v60  ;;  %v513_v1 = vpop.f32.mrf.mxu1 }
 0x115   :  { %v391_v2 = vpop.f32.mrf.mxu0 }
 0x116   :  { %v532_v3 = vadd.f32 %v525_v61, %v518_v0  ;;  %v396_v4 = vmax.f32 %v273_v63, %v391_v2  ;;  %v514_v5 = vpop.f32.mrf.mxu1 }
 0x117   :  { %v393_v6 = vpop.f32.mrf.mxu0 }
 0x118   :  { %v534_v7 = vmax.f32 %v532_v3, 0.0  ;;  %v519_v8 = vmax.f32 %v396_v4, %v514_v5  ;;  %v516_v9 = vpop.f32.mrf.mxu1 }
 0x11a   :  { %536 = vst [vmem:[%s907_s3] sm:$0xff] %v534_v7  ;;  %v533_v11 = vadd.f32 %v530_v10, %v519_v8 }
 0x11c   :  { %v535_v12 = vmax.f32 %v533_v11, 0.0 }
 0x11e   :  { %537 = vst [vmem:[%s907_s3 + $0x8] sm:$0xff] %v535_v12 }

// kernel: convnet_forward.5
= control target key start
LH: loop header
LB: loop body
LE: loop exit
PB: predicated region body
PF: predicated region fallthrough
CT: control target
= control target key end

     0   :  { %v1324_v0 = vmov 0   ;;  %vm493_vm0 = vcmask 130048   ;;  %vm838_vm1 = vcmask 982016   ;;  %vm857_vm2 = vcmask 1043456   ;;  %s1743_s0 = inlined_call_operand.vmem [shape: bf16[400,128], index: 0, kind: input, shape index: {}]   ;;  %s1744_s1 = inlined_call_operand.vmem [shape: bf16[120,400], index: 1, kind: input, shape index: {}]   ;;  %s1745_s2 = inlined_call_operand.vmem [shape: f32[120,1], index: 2, kind: input, shape index: {}]   ;;  %s1746_s4 = inlined_call_operand.vmem [shape: f32[84,1], index: 4, kind: input, shape index: {}]   ;;  %s1747_s6 = inlined_call_operand.vmem [shape: f32[10,1], index: 6, kind: input, shape index: {}]   ;;  %s1748_s3 = inlined_call_operand.vmem [shape: bf16[84,120], index: 3, kind: input, shape index: {}]   ;;  %s1749_s5 = inlined_call_operand.vmem [shape: bf16[10,84], index: 5, kind: input, shape index: {}]   ;;  %s1750_s7 = inlined_call_operand.vmem [shape: f32[10,128], index: 7, kind: output, shape index: {}]  }
   0x1   :  { %614 = vmatprep.subr.bf16.mxu1 %v1324_v0  ;;  %v1246_v1 = vld [vmem:[%s1743_s0 + $0x78] sm:$0xff]   ;;  %1245 = vset.pattern.permute.xlu1 %v1324_v0  ;;  %v1249_v4 = vld [vmem:[%s1743_s0 + $0x70] sm:$0xff]   ;;  %v1252_v7 = vld [vmem:[%s1743_s0 + $0x68] sm:$0xff]   ;;  %vm1326_vm3 = vmmov 0   ;;  %vm981_vm4 = vcmask 1041408   ;;  %vm977_vm5 = vcmask 687104  }
   0x2   :  { %v1247_v2 = vld [vmem:[%s1743_s0 + $0xb8] sm:$0xff]   ;;  %1244 = vset.pattern.permute.xlu0 %v1324_v0  ;;  %1111 = vmatprep.subr.bf16.mxu0 %v1246_v1  ;;  %v1250_v5 = vld [vmem:[%s1743_s0 + $0xb0] sm:$0xff]   ;;  %v1253_v8 = vld [vmem:[%s1743_s0 + $0xa8] sm:$0xff]  }
   0x3   :  { %v1248_v3 = vld [vmem:[%s1743_s0 + $0x38] sm:$0xff]   ;;  %615 = vmatpush1.bf16.msra.mxu1 %v1247_v2  ;;  %v1251_v6 = vld [vmem:[%s1743_s0 + $0x30] sm:$0xff]   ;;  %v1254_v9 = vld [vmem:[%s1743_s0 + $0x28] sm:$0xff]  }
   0x4   :  { %1112 = vmatpush3.bf16.msra.mxu0 %v1248_v3  ;;  %616 = vmatprep.subr.bf16.mxu1 %v1324_v0  ;;  %v1255_v10 = vld [vmem:[%s1743_s0 + $0x60] sm:$0xff]   ;;  %v1258_v13 = vld [vmem:[%s1743_s0 + $0x58] sm:$0xff]   ;;  %v1261_v16 = vld [vmem:[%s1743_s0 + $0x50] sm:$0xff]  }
   0x5   :  { %1113 = vmatprep.subr.bf16.mxu0 %v1249_v4  ;;  %v1256_v11 = vld [vmem:[%s1743_s0 + $0xa0] sm:$0xff]   ;;  %v1259_v14 = vld [vmem:[%s1743_s0 + $0x98] sm:$0xff]   ;;  %v1262_v17 = vld [vmem:[%s1743_s0 + $0x90] sm:$0xff]  }
   0x6   :  { %v1257_v12 = vld [vmem:[%s1743_s0 + $0x20] sm:$0xff]   ;;  %v1260_v15 = vld [vmem:[%s1743_s0 + $0x18] sm:$0xff]   ;;  %v1263_v18 = vld [vmem:[%s1743_s0 + $0x10] sm:$0xff]  }
   0x7   :  { %617 = vmatpush1.bf16.msra.mxu1 %v1250_v5  ;;  %v1264_v19 = vld [vmem:[%s1743_s0 + $0x48] sm:$0xff]   ;;  %v1267_v22 = vld [vmem:[%s1743_s0 + $0x40] sm:$0xff]   ;;  %v121_v35 = vld [vmem:[%s1745_s2 + $0x70] sm:$0xff] }
   0x8   :  { %1114 = vmatpush3.bf16.msra.mxu0 %v1251_v6  ;;  %618 = vmatprep.subr.bf16.mxu1 %v1324_v0  ;;  %v1265_v20 = vld [vmem:[%s1743_s0 + $0x88] sm:$0xff]   ;;  %v1272_v23 = vld [vmem:[%s1744_s1 + $0x4] ss:$16 sps:$4 sm:$0xff]   ;;  %v1270_v27 = vld [vmem:[%s1744_s1] ss:$16 sps:$4 sm:$0xff]  }
   0x9   :  { %1115 = vmatprep.subr.bf16.mxu0 %v1252_v7  ;;  %v1266_v21 = vld [vmem:[%s1743_s0 + $0x8] sm:$0xff]   ;;  %v1268_v24 = vld [vmem:[%s1743_s0 + $0x80] sm:$0xff]   ;;  %550 = vmatprep.mubr.bf16.mxu0 %v1272_v23  ;;  %v117_v39 = vld [vmem:[%s1745_s2 + $0x50] sm:$0xff] }
   0xa   :  { %v1276_v25 = vld [vmem:[%s1744_s1 + $0xc] ss:$16 sps:$4 sm:$0xff]   ;;  %v1269_v26 = vld [vmem:[%s1743_s0] sm:$0xff]   ;;  %v1274_v30 = vld [vmem:[%s1744_s1 + $0x8] ss:$16 sps:$4 sm:$0xff]   ;;  %194 = vperm.xlu0 %1244, %v121_v35  }
   0xb   :  { %619 = vmatpush1.bf16.msra.mxu1 %v1253_v8  ;;  %1089 = vmatprep.mubr.msk.bf16.mxu1 %vm493_vm0, %v1276_v25  ;;  %v1273_v28 = vld [vmem:[%s1743_s0 + $0xc0] sm:$0xff]   ;;  %v1280_v31 = vld [vmem:[%s1744_s1 + $0x2c] ss:$16 sps:$4 sm:$0xff]   ;;  %v1282_v34 = vld [vmem:[%s1744_s1 + $0x28] ss:$16 sps:$4 sm:$0xff]  }
   0xc   :  { %1116 = vmatpush3.bf16.msra.mxu0 %v1254_v9  ;;  %620 = vmatprep.subr.bf16.mxu1 %v1324_v0  ;;  %v1277_v29 = vld [vmem:[%s1744_s1 + $0x24] ss:$16 sps:$4 sm:$0xff]   ;;  %v1279_v32 = vld [vmem:[%s1744_s1 + $0x20] ss:$16 sps:$4 sm:$0xff]   ;;  %v120_v36 = vld [vmem:[%s1745_s2 + $0x68] sm:$0xff] }
   0xd   :  { %1117 = vmatprep.subr.bf16.mxu0 %v1255_v10  ;;  %v1283_v33 = vld [vmem:[%s1744_s1 + $0x44] ss:$16 sps:$4 sm:$0xff]   ;;  %v1286_v37 = vld [vmem:[%s1744_s1 + $0x4c] ss:$16 sps:$4 sm:$0xff]   ;;  %189 = vperm.xlu1 %1245, %v120_v36   ;;  %v1285_v40 = vld [vmem:[%s1744_s1 + $0x40] ss:$16 sps:$4 sm:$0xff]  }
   0xe   :  { %v119_v38 = vld [vmem:[%s1745_s2 + $0x60] sm:$0xff]  ;;  %v118_v42 = vld [vmem:[%s1745_s2 + $0x58] sm:$0xff]  ;;  %v116_v46 = vld [vmem:[%s1745_s2 + $0x48] sm:$0xff] }
   0xf   :  { %621 = vmatpush1.bf16.msra.mxu1 %v1256_v11  ;;  %184 = vperm.xlu0 %1244, %v119_v38   ;;  %v1289_v41 = vld [vmem:[%s1744_s1 + $0x64] ss:$16 sps:$4 sm:$0xff]   ;;  %v1288_v44 = vld [vmem:[%s1744_s1 + $0x48] ss:$16 sps:$4 sm:$0xff]   ;;  %v1292_v45 = vld [vmem:[%s1744_s1 + $0x6c] ss:$16 sps:$4 sm:$0xff]  }
  0x10   :  { %1118 = vmatpush3.bf16.msra.mxu0 %v1257_v12  ;;  %622 = vmatprep.subr.bf16.mxu1 %v1324_v0  ;;  %v115_v43 = vld [vmem:[%s1745_s2 + $0x40] sm:$0xff]  ;;  %v113_v47 = vld [vmem:[%s1745_s2 + $0x30] sm:$0xff]  ;;  %v114_v50 = vld [vmem:[%s1745_s2 + $0x38] sm:$0xff] }
  0x11   :  { %1119 = vmatprep.subr.bf16.mxu0 %v1258_v13  ;;  %174 = vperm.xlu1 %1245, %v117_v39   ;;  %v1291_v48 = vld [vmem:[%s1744_s1 + $0x60] ss:$16 sps:$4 sm:$0xff]   ;;  %v1295_v49 = vld [vmem:[%s1744_s1 + $0x84] ss:$16 sps:$4 sm:$0xff]   ;;  %v1294_v52 = vld [vmem:[%s1744_s1 + $0x68] ss:$16 sps:$4 sm:$0xff]  }
  0x12   :  { %v111_v51 = vld [vmem:[%s1745_s2 + $0x20] sm:$0xff]  ;;  %v1298_v53 = vld [vmem:[%s1744_s1 + $0x8c] ss:$16 sps:$4 sm:$0xff]   ;;  %v109_v55 = vld [vmem:[%s1745_s2 + $0x10] sm:$0xff] }
  0x13   :  { %623 = vmatpush1.bf16.msra.mxu1 %v1259_v14  ;;  %179 = vperm.xlu0 %1244, %v118_v42   ;;  %v112_v54 = vld [vmem:[%s1745_s2 + $0x28] sm:$0xff]  ;;  %v1297_v56 = vld [vmem:[%s1744_s1 + $0x80] ss:$16 sps:$4 sm:$0xff]   ;;  %v1301_v57 = vld [vmem:[%s1744_s1 + $0xa4] ss:$16 sps:$4 sm:$0xff]  }
  0x14   :  { %1120 = vmatpush3.bf16.msra.mxu0 %v1260_v15  ;;  %624 = vmatprep.subr.bf16.mxu1 %v1324_v0  ;;  %v110_v58 = vld [vmem:[%s1745_s2 + $0x18] sm:$0xff]  ;;  %v107_v59 = vld [vmem:[%s1745_s2] sm:$0xff]  ;;  %v108_v62 = vld [vmem:[%s1745_s2 + $0x8] sm:$0xff] }
  0x15   :  { %1121 = vmatprep.subr.bf16.mxu0 %v1261_v16  ;;  %164 = vperm.xlu1 %1245, %v115_v43   ;;  %v1300_v60 = vld [vmem:[%s1744_s1 + $0x88] ss:$16 sps:$4 sm:$0xff]   ;;  %v1304_v61 = vld [vmem:[%s1744_s1 + $0xac] ss:$16 sps:$4 sm:$0xff]   ;;  %v754_v63 = vld [vmem:[%s1746_s4 + $0x50] sm:$0xf] }
  0x16   :  { %v1307_v1 = vld [vmem:[%s1744_s1 + $0xc4] ss:$16 sps:$4 sm:$0xff]   ;;  %v753_v3 = vld [vmem:[%s1746_s4 + $0x48] sm:$0xff]  ;;  %v751_v8 = vld [vmem:[%s1746_s4 + $0x38] sm:$0xff] }
  0x17   :  { %625 = vmatpush1.bf16.msra.mxu1 %v1262_v17  ;;  %169 = vperm.xlu0 %1244, %v116_v46   ;;  %v752_v2 = vld [vmem:[%s1746_s4 + $0x40] sm:$0xff]  ;;  %v1306_v4 = vld [vmem:[%s1744_s1 + $0xa8] ss:$16 sps:$4 sm:$0xff]   ;;  %v1310_v5 = vld [vmem:[%s1744_s1 + $0xcc] ss:$16 sps:$4 sm:$0xff]  }
  0x18   :  { %1122 = vmatpush3.bf16.msra.mxu0 %v1263_v18  ;;  %626 = vmatprep.subr.bf16.mxu1 %v1324_v0  ;;  %v750_v6 = vld [vmem:[%s1746_s4 + $0x30] sm:$0xff]  ;;  %v55_v7 = vld [vmem:[%s1744_s1 + $0xe0] sm:$0xff]  ;;  %v56_v11 = vld [vmem:[%s1744_s1 + $0xe8] sm:$0xff] }
  0x19   :  { %1123 = vmatprep.subr.bf16.mxu0 %v1264_v19  ;;  %154 = vperm.xlu1 %1245, %v113_v47   ;;  %v1309_v9 = vld [vmem:[%s1744_s1 + $0xc0] ss:$16 sps:$4 sm:$0xff]   ;;  %v1061_v10 = vcombine.high %v55_v7, %v55_v7  ;;  %v749_v13 = vld [vmem:[%s1746_s4 + $0x28] sm:$0xff]  ;;  %v1063_v15 = vcombine.high %v56_v11, %v56_v11  ;;  %v747_v17 = vld [vmem:[%s1746_s4 + $0x18] sm:$0xff]  ;;  %v1060_v18 = vcombine.low %v55_v7, %v55_v7 }
  0x1a   :  { %v748_v12 = vld [vmem:[%s1746_s4 + $0x20] sm:$0xff]  ;;  %v1312_v14 = vld [vmem:[%s1744_s1 + $0xc8] ss:$16 sps:$4 sm:$0xff]   ;;  %v746_v16 = vld [vmem:[%s1746_s4 + $0x10] sm:$0xff] }
  0x1b   :  { %627 = vmatpush1.bf16.msra.mxu1 %v1265_v20  ;;  %159 = vperm.xlu0 %1244, %v114_v50   ;;  %v744_v19 = vld [vmem:[%s1746_s4] sm:$0xff]  ;;  %v745_v20 = vld [vmem:[%s1746_s4 + $0x8] sm:$0xff] }
  0x1c   :  { %1124 = vmatpush3.bf16.msra.mxu0 %v1266_v21  ;;  %628 = vmatprep.subr.bf16.mxu1 %v1324_v0  ;;  %v1062_v21 = vcombine.low %v56_v11, %v56_v11  ;;  %v961_v23 = vld [vmem:[%s1747_s6 + $0x8] sm:$0x3] }
  0x1d   :  { %1125 = vmatprep.subr.bf16.mxu0 %v1267_v22  ;;  %144 = vperm.xlu1 %1245, %v111_v51   ;;  %v960_v22 = vld [vmem:[%s1747_s6] sm:$0xff] }
  0x1f   :  { %629 = vmatpush1.bf16.msra.mxu1 %v1268_v24  ;;  %149 = vperm.xlu0 %1244, %v112_v54  }
  0x20   :  { %1126 = vmatpush3.bf16.msra.mxu0 %v1269_v26  ;;  %644 = vmatprep.subr.bf16.mxu1 %v1324_v0  ;;  %v1303_v0 = vld [vmem:[%s1744_s1 + $0xa0] ss:$16 sps:$4 sm:$0xff]  }
  0x21   :  { %134 = vperm.xlu1 %1245, %v109_v55  }
  0x23   :  { %551 = vmatmul.mubr.bf16.vlgmr.msra.gmra.mxu0 %v1270_v27  ;;  %645 = vmatpush2.bf16.msra.mxu1 %v1273_v28  ;;  %v1317_v27 = vld [vmem:[%s1748_s3] sm:$0xff]  }
  0x24   :  { %558 = vmatprep.mubr.bf16.mxu0 %v1277_v29  ;;  %139 = vperm.xlu0 %1244, %v110_v58  }
  0x25   :  { %124 = vperm.xlu1 %1245, %v107_v59  }
  0x26   :  { %647 = vmatmul.mubr.bf16.vlgmr.msra.gmra.mxu1 %v1274_v30 }
  0x27   :  { %1090 = vmatprep.mubr.msk.bf16.mxu1 %vm493_vm0, %v1280_v31 }
  0x28   :  { %129 = vperm.xlu0 %1244, %v108_v62  }
  0x29   :  { %807 = vperm.xlu1 %1245, %v754_v63  }
  0x2b   :  { %559 = vmatmul.mubr.bf16.gmra.mxu0 %v1279_v32 }
  0x2c   :  { %566 = vmatprep.mubr.bf16.mxu0 %v1283_v33  ;;  %797 = vperm.xlu0 %1244, %v752_v2  }
  0x2d   :  { %802 = vperm.xlu1 %1245, %v753_v3  }
  0x2e   :  { %655 = vmatmul.mubr.bf16.gmra.mxu1 %v1282_v34 }
  0x2f   :  { %1091 = vmatprep.mubr.msk.bf16.mxu1 %vm493_vm0, %v1286_v37 }
  0x30   :  { %787 = vperm.xlu0 %1244, %v750_v6  }
  0x31   :  { %792 = vperm.xlu1 %1245, %v751_v8  }
  0x33   :  { %567 = vmatmul.mubr.bf16.gmra.mxu0 %v1285_v40 }
  0x34   :  { %574 = vmatprep.mubr.bf16.mxu0 %v1289_v41  ;;  %777 = vperm.xlu0 %1244, %v748_v12  }
  0x35   :  { %782 = vperm.xlu1 %1245, %v749_v13  }
  0x36   :  { %663 = vmatmul.mubr.bf16.gmra.mxu1 %v1288_v44 }
  0x37   :  { %1092 = vmatprep.mubr.msk.bf16.mxu1 %vm493_vm0, %v1292_v45 }
  0x38   :  { %767 = vperm.xlu0 %1244, %v746_v16  }
  0x39   :  { %772 = vperm.xlu1 %1245, %v747_v17  }
  0x3b   :  { %575 = vmatmul.mubr.bf16.gmra.mxu0 %v1291_v48 }
  0x3c   :  { %582 = vmatprep.mubr.bf16.mxu0 %v1295_v49  ;;  %757 = vperm.xlu0 %1244, %v744_v19  }
  0x3d   :  { %762 = vperm.xlu1 %1245, %v745_v20  }
  0x3e   :  { %671 = vmatmul.mubr.bf16.gmra.mxu1 %v1294_v52 }
  0x3f   :  { %1093 = vmatprep.mubr.msk.bf16.mxu1 %vm493_vm0, %v1298_v53 }
  0x40   :  { %964 = vperm.xlu0 %1244, %v960_v22  }
  0x41   :  { %969 = vperm.xlu1 %1245, %v961_v23  }
  0x43   :  { %583 = vmatmul.mubr.bf16.gmra.mxu0 %v1297_v56 }
  0x44   :  { %590 = vmatprep.mubr.bf16.mxu0 %v1301_v57 }
  0x46   :  { %679 = vmatmul.mubr.bf16.gmra.mxu1 %v1300_v60 }
  0x47   :  { %1094 = vmatprep.mubr.msk.bf16.mxu1 %vm493_vm0, %v1304_v61 }
  0x4b   :  { %591 = vmatmul.mubr.bf16.gmra.mxu0 %v1303_v0 }
  0x4c   :  { %598 = vmatprep.mubr.bf16.mxu0 %v1307_v1 }
  0x4e   :  { %687 = vmatmul.mubr.bf16.gmra.mxu1 %v1306_v4 }
  0x4f   :  { %1095 = vmatprep.mubr.msk.bf16.mxu1 %vm493_vm0, %v1310_v5 }
  0x53   :  { %599 = vmatmul.mubr.bf16.gmra.mxu0 %v1309_v9 }
  0x54   :  { %606 = vmatprep.mubr.bf16.mxu0 %v1061_v10 }
  0x56   :  { %695 = vmatmul.mubr.bf16.gmra.mxu1 %v1312_v14 }
  0x57   :  { %1096 = vmatprep.mubr.msk.bf16.mxu1 %vm493_vm0, %v1063_v15 }
  0x5b   :  { %607 = vmatmul.mubr.bf16.gmra.mxu0 %v1060_v18 }
  0x5c   :  { %1212 = vmatprep.mubr.msk.bf16.mxu0 %vm838_vm1, %v1317_v27 }
  0x5e   :  { %703 = vmatmul.mubr.bf16.gmra.mxu1 %v1062_v21 }
  0x85   :  { %v1635_v24 = vpop.permute.xlu0 %194 }
  0x88   :  { %v1637_v25 = vpop.permute.xlu1 %189 }
  0x8a   :  { %v1639_v26 = vpop.permute.xlu0 %184 }
  0x8c   :  { %v1644_v28 = vpop.permute.xlu1 %174 }
  0x8e   :  { %v1647_v29 = vpop.permute.xlu0 %179 }
  0x90   :  { %v1649_v30 = vpop.permute.xlu1 %164 }
  0x92   :  { %v1651_v31 = vpop.permute.xlu0 %169 }
  0x94   :  { %v1653_v32 = vpop.permute.xlu1 %154 }
  0x96   :  { %v1655_v33 = vpop.permute.xlu0 %159 }
  0x98   :  { %v1657_v34 = vpop.permute.xlu1 %144 }
  0x9a   :  { %v1659_v35 = vpop.permute.xlu0 %149 }
  0x9c   :  { %v135_v36 = vpop.permute.xlu1 %134 }
  0x9f   :  { %v140_v38 = vpop.permute.xlu0 %139 }
  0xa0   :  { %v125_v40 = vpop.permute.xlu1 %124 }
  0xa3   :  { %v130_v47 = vpop.permute.xlu0 %129 }
  0xe3   :  { %v1127_v37 = vpop.f32.mrf.mxu0 }
  0xe5   :  { %v1128_v39 = vpop.f32.mrf.mxu0 }
  0xe6   :  { %v1129_v41 = vadd.f32 %v1128_v39, %v1127_v37  ;;  %v648_v42 = vpop.f32.mrf.mxu1 }
  0xe7   :  { %v1130_v43 = vpop.f32.mrf.mxu0 }
  0xe8   :  { %v553_v44 = vadd.f32 %v1129_v41, %v125_v40  ;;  %v650_v45 = vpop.f32.mrf.mxu1 }
  0xe9   :  { %v1131_v46 = vpop.f32.mrf.mxu0 }
  0xea   :  { %v649_v48 = vadd.f32 %v648_v42, %v553_v44  ;;  %v1132_v49 = vadd.f32 %v1131_v46, %v1130_v43  ;;  %v651_v50 = vpop.f32.mrf.mxu1 }
  0xeb   :  { %v1133_v51 = vpop.f32.mrf.mxu0 }
  0xec   :  { %v556_v52 = vadd.f32 %v1132_v49, %v130_v47  ;;  %v653_v53 = vpop.f32.mrf.mxu1  ;;  %v710_v59 = vmax.f32 %v649_v48, 0.0 }
  0xed   :  { %v1134_v54 = vpop.f32.mrf.mxu0 }
  0xee   :  { %v652_v55 = vadd.f32 %v651_v50, %v556_v52  ;;  %v1135_v56 = vadd.f32 %v1134_v54, %v1133_v51  ;;  %v656_v57 = vpop.f32.mrf.mxu1 }
  0xef   :  { %v1136_v58 = vpop.f32.mrf.mxu0 }
  0xf0   :  { %v711_v60 = vmax.f32 %v652_v55, 0.0  ;;  %v561_v61 = vadd.f32 %v1135_v56, %v135_v36  ;;  %v658_v62 = vpop.f32.mrf.mxu1 }
  0xf1   :  { %v1137_v63 = vpop.f32.mrf.mxu0 }
  0xf2   :  { %v657_v0 = vadd.f32 %v656_v57, %v561_v61  ;;  %v1138_v1 = vadd.f32 %v1137_v63, %v1136_v58  ;;  %v659_v2 = vpop.f32.mrf.mxu1  ;;  %v1661_v3 = vpack.c.bf16 %v711_v60, %v710_v59 }
  0xf3   :  { %v1663_v4 = vpop.f32.mrf.mxu0 }
  0xf4   :  { %v564_v5 = vadd.f32 %v1138_v1, %v140_v38  ;;  %v661_v6 = vpop.f32.mrf.mxu1  ;;  %v712_v11 = vmax.f32 %v657_v0, 0.0 }
  0xf5   :  { %v1665_v7 = vpop.f32.mrf.mxu0 }
  0xf6   :  { %v660_v8 = vadd.f32 %v659_v2, %v564_v5  ;;  %v1667_v9 = vpop.f32.mrf.mxu1 }
  0xf7   :  { %v1669_v10 = vpop.f32.mrf.mxu0 }
  0xf8   :  { %v713_v12 = vmax.f32 %v660_v8, 0.0  ;;  %v666_v13 = vpop.f32.mrf.mxu1 }
  0xf9   :  { %v1671_v14 = vpop.f32.mrf.mxu0 }
  0xfa   :  { %v1673_v15 = vpack.c.bf16 %v713_v12, %v712_v11  ;;  %v1675_v16 = vpop.f32.mrf.mxu1 }
  0xfb   :  { %v1145_v17 = vpop.f32.mrf.mxu0 }
  0xfc   :  { %v669_v18 = vpop.f32.mrf.mxu1 }
  0xfd   :  { %v1146_v19 = vpop.f32.mrf.mxu0 }
  0xfe   :  { %v1677_v20 = vpop.f32.mrf.mxu1 }
  0xff   :  { %v1148_v21 = vpop.f32.mrf.mxu0 }
 0x100   :  { %v674_v22 = vpop.f32.mrf.mxu1 }
 0x101   :  { %v1149_v23 = vpop.f32.mrf.mxu0 }
 0x102   :  { %v1679_v27 = vpop.f32.mrf.mxu1 }
 0x103   :  { %v1151_v36 = vpop.f32.mrf.mxu0 }
 0x104   :  { %v677_v37 = vpop.f32.mrf.mxu1 }
 0x105   :  { %v1152_v38 = vpop.f32.mrf.mxu0 }
 0x106   :  { %v1681_v39 = vpop.f32.mrf.mxu1 }
 0x107   :  { %v1154_v40 = vpop.f32.mrf.mxu0 }
 0x108   :  { %v682_v41 = vpop.f32.mrf.mxu1 }
 0x109   :  { %v1155_v42 = vpop.f32.mrf.mxu0 }
 0x10a   :  { %v683_v43 = vpop.f32.mrf.mxu1  ;;  %v1156_v13 = vadd.f32 %v1155_v42, %v1154_v40  ;;  %v1147_v42 = vadd.f32 %v1146_v19, %v1145_v17  ;;  %v1141_v17 = vadd.f32 %v1665_v7, %v1663_v4 }
 0x10b   :  { %v1157_v44 = vpop.f32.mrf.mxu0 }
 0x10c   :  { %v685_v45 = vpop.f32.mrf.mxu1  ;;  %v577_v19 = vadd.f32 %v1147_v42, %v1653_v32 }
 0x10d   :  { %v1158_v46 = vpop.f32.mrf.mxu0 }
 0x10e   :  { %v688_v47 = vpop.f32.mrf.mxu1  ;;  %v1159_v5 = vadd.f32 %v1158_v46, %v1157_v44  ;;  %v1150_v44 = vadd.f32 %v1149_v23, %v1148_v21 }
 0x10f   :  { %v1160_v48 = vpop.f32.mrf.mxu0 }
 0x110   :  { %v690_v49 = vpop.f32.mrf.mxu1 }
 0x111   :  { %v1161_v50 = vpop.f32.mrf.mxu0  ;;  %v1153_v49 = vadd.f32 %v1152_v38, %v1151_v36  ;;  %v580_v36 = vadd.f32 %v1150_v44, %v1655_v33 }
 0x112   :  { %v691_v51 = vpop.f32.mrf.mxu1  ;;  %v1162_v63 = vadd.f32 %v1161_v50, %v1160_v48  ;;  %v593_v48 = vadd.f32 %v1159_v5, %v1644_v28  ;;  %v1144_v28 = vadd.f32 %v1671_v14, %v1669_v10 }
 0x113   :  { %v1163_v52 = vpop.f32.mrf.mxu0  ;;  %v676_v10 = vadd.f32 %v1679_v27, %v580_v36 }
 0x114   :  { %v693_v53 = vpop.f32.mrf.mxu1  ;;  %v596_v18 = vadd.f32 %v1162_v63, %v1647_v29  ;;  %v585_v29 = vadd.f32 %v1153_v49, %v1649_v30 }
 0x115   :  { %v1164_v54 = vpop.f32.mrf.mxu0  ;;  %v717_v32 = vmax.f32 %v676_v10, 0.0 }
 0x116   :  { %v696_v55 = vpop.f32.mrf.mxu1  ;;  %v1165_v59 = vadd.f32 %v1164_v54, %v1163_v52  ;;  %v692_v46 = vadd.f32 %v691_v51, %v596_v18  ;;  %v681_v30 = vadd.f32 %v1681_v39, %v585_v29  ;;  %v572_v51 = vadd.f32 %v1144_v28, %v1659_v35 }
 0x117   :  { %v1166_v56 = vpop.f32.mrf.mxu0 }
 0x118   :  { %v698_v57 = vpop.f32.mrf.mxu1  ;;  %v601_v6 = vadd.f32 %v1165_v59, %v1639_v26  ;;  %v588_v26 = vadd.f32 %v1156_v13, %v1651_v31  ;;  %v721_v21 = vmax.f32 %v692_v46, 0.0  ;;  %v668_v4 = vadd.f32 %v1675_v16, %v572_v51  ;;  %v1321_v16 = vld [vmem:[%s1748_s3 + $0x20] sm:$0xff]  }
 0x119   :  { %v1167_v58 = vpop.f32.mrf.mxu0 }
 0x11a   :  { %v1168_v60 = vadd.f32 %v1167_v58, %v1166_v56  ;;  %v699_v61 = vpop.f32.mrf.mxu1  ;;  %v684_v38 = vadd.f32 %v683_v43, %v588_v26  ;;  %v569_v43 = vadd.f32 %v1141_v17, %v1657_v34  ;;  %v718_v58 = vmax.f32 %v681_v30, 0.0  ;;  %v1318_v34 = vld [vmem:[%s1748_s3 + $0x8] sm:$0xff]  }
 0x11b   :  { %v1169_v62 = vpop.f32.mrf.mxu0  ;;  %v715_v35 = vmax.f32 %v668_v4, 0.0 }
 0x11c   :  { %v604_v0 = vadd.f32 %v1168_v60, %v1637_v25  ;;  %v701_v1 = vpop.f32.mrf.mxu1  ;;  %v697_v25 = vadd.f32 %v696_v55, %v601_v6  ;;  %v719_v33 = vmax.f32 %v684_v38, 0.0  ;;  %v673_v55 = vadd.f32 %v1677_v20, %v577_v19 }
 0x11d   :  { %v1170_v2 = vpop.f32.mrf.mxu0  ;;  %v665_v39 = vadd.f32 %v1667_v9, %v569_v43  ;;  %v1319_v9 = vld [vmem:[%s1748_s3 + $0x10] sm:$0xff]   ;;  %v1325_v20 = vmov 0.0  }
 0x11e   :  { %v1171_v8 = vadd.f32 %v1170_v2, %v1169_v62  ;;  %v704_v11 = vpop.f32.mrf.mxu1  ;;  %v700_v22 = vadd.f32 %v699_v61, %v604_v0  ;;  %v722_v56 = vmax.f32 %v697_v25, 0.0  ;;  %v740_v7 = vpack.c.bf16 %v719_v33, %v718_v58  ;;  %1224 = vmatprep.subr.bf16.mxu1 %v1325_v20  ;;  %1236 = vmatprep.mubr.msk.bf16.mxu1 %vm1326_vm3, %v1325_v20  ;;  %v808_v0 = vpop.permute.xlu1 %807 }
 0x11f   :  { %v1172_v12 = vpop.f32.mrf.mxu0  ;;  %v716_v59 = vmax.f32 %v673_v55, 0.0  ;;  %v714_v60 = vmax.f32 %v665_v39, 0.0  ;;  %v1323_v39 = vld [vmem:[%s1749_s5] sm:$0x1f]  }
 0x120   :  { %v609_v37 = vadd.f32 %v1171_v8, %v1635_v24  ;;  %v706_v41 = vpop.f32.mrf.mxu1  ;;  %v723_v53 = vmax.f32 %v700_v22, 0.0  ;;  %v689_v24 = vadd.f32 %v688_v47, %v593_v48 }
 0x121   :  { %v1173_v45 = vpop.f32.mrf.mxu0  ;;  %v739_v27 = vpack.c.bf16 %v717_v32, %v716_v59  ;;  %v738_v61 = vpack.c.bf16 %v715_v35, %v714_v60 }
 0x122   :  { %v705_v50 = vadd.f32 %v704_v11, %v609_v37  ;;  %v707_v52 = vpop.f32.mrf.mxu1  ;;  %v742_v23 = vpack.c.bf16 %v723_v53, %v722_v56  ;;  %v720_v47 = vmax.f32 %v689_v24, 0.0  ;;  %v803_v6 = vpop.permute.xlu1 %802 }
 0x123   :  { %v798_v11 = vpop.permute.xlu0 %797 }
 0x124   :  { %v724_v54 = vmax.f32 %v705_v50, 0.0  ;;  %v708_v40 = vpop.f32.mrf.mxu1  ;;  %v741_v14 = vpack.c.bf16 %v721_v21, %v720_v47 }
 0x126   :  { %v743_v57 = vpack.c.bf16 %v724_v54, %v724_v54  ;;  %v793_v18 = vpop.permute.xlu1 %792 }
 0x127   :  { %v788_v41 = vpop.permute.xlu0 %787 }
 0x128   :  { %1240 = vmatprep.subr.msk.bf16.mxu0 %vm857_vm2, %v743_v57  ;;  %v859_v31 = vsel %vm857_vm2, %v743_v57, 0 }
 0x129   :  { %1197 = vmatpush3.bf16.msra.mxu0 %v859_v31 }
 0x12a   :  { %1198 = vmatprep.subr.bf16.mxu0 %v742_v23  ;;  %v783_v52 = vpop.permute.xlu1 %782 }
 0x12b   :  { %v778_v54 = vpop.permute.xlu0 %777 }
 0x12d   :  { %1199 = vmatpush3.bf16.msra.mxu0 %v742_v23 }
 0x12e   :  { %1200 = vmatprep.subr.bf16.mxu0 %v741_v14  ;;  %v773_v28 = vpop.permute.xlu1 %772 }
 0x12f   :  { %v768_v21 = vpop.permute.xlu0 %767 }
 0x131   :  { %1201 = vmatpush3.bf16.msra.mxu0 %v741_v14 }
 0x132   :  { %1202 = vmatprep.subr.bf16.mxu0 %v740_v7  ;;  %v763_v47 = vpop.permute.xlu1 %762 }
 0x133   :  { %v758_v14 = vpop.permute.xlu0 %757 }
 0x135   :  { %1203 = vmatpush3.bf16.msra.mxu0 %v740_v7 }
 0x136   :  { %1204 = vmatprep.subr.bf16.mxu0 %v739_v27 }
 0x137   :  { %v965_v59 = vpop.permute.xlu0 %964 }
 0x139   :  { %1205 = vmatpush3.bf16.msra.mxu0 %v739_v27 }
 0x13a   :  { %1206 = vmatprep.subr.bf16.mxu0 %v738_v61 }
 0x13d   :  { %1207 = vmatpush3.bf16.msra.mxu0 %v738_v61  ;;  %v970_v61 = vpop.permute.xlu1 %969 }
 0x13e   :  { %1208 = vmatprep.subr.bf16.mxu0 %v1673_v15 }
 0x141   :  { %1209 = vmatpush3.bf16.msra.mxu0 %v1673_v15  ;;  %v1320_v15 = vld [vmem:[%s1748_s3 + $0x18] sm:$0xff]  }
 0x142   :  { %1210 = vmatprep.subr.bf16.mxu0 %v1661_v3 }
 0x145   :  { %1211 = vmatpush3.bf16.msra.mxu0 %v1661_v3  ;;  %v1322_v3 = vld [vmem:[%s1748_s3 + $0x28] ss:$0 sps:$4 sm:$0x33]  }
 0x148   :  { %1213 = vmatmul.mubr.msk.bf16.vlgmr.msra.gmra.mxu0 %vm838_vm1, %v1318_v34 }
 0x149   :  { %1216 = vmatprep.mubr.msk.bf16.mxu0 %vm838_vm1, %v1319_v9 }
 0x150   :  { %1217 = vmatmul.mubr.msk.bf16.gmra.mxu0 %vm838_vm1, %v1320_v15 }
 0x151   :  { %1220 = vmatprep.mubr.msk.bf16.mxu0 %vm838_vm1, %v1321_v16 }
 0x158   :  { %1221 = vmatmul.mubr.msk.bf16.gmra.mxu0 %vm838_vm1, %v1322_v3 }
 0x208   :  { %v1214_v62 = vpop.f32.mrf.mxu0 }
 0x209   :  { %v904_v19 = vadd.f32 %v1214_v62, %v768_v21 }
 0x20a   :  { %v895_v63 = vpop.f32.mrf.mxu0 }
 0x20b   :  { %v943_v43 = vmax.f32 %v904_v19, 0.0  ;;  %v896_v55 = vadd.f32 %v895_v63, %v758_v14 }
 0x20c   :  { %v1215_v1 = vpop.f32.mrf.mxu0 }
 0x20d   :  { %v907_v23 = vadd.f32 %v1215_v1, %v773_v28  ;;  %v941_v32 = vmax.f32 %v896_v55, 0.0 }
 0x20e   :  { %v898_v2 = vpop.f32.mrf.mxu0 }
 0x20f   :  { %v944_v51 = vmax.f32 %v907_v23, 0.0  ;;  %v899_v10 = vadd.f32 %v898_v2, %v763_v47 }
 0x210   :  { %v1218_v5 = vpop.f32.mrf.mxu0 }
 0x211   :  { %v920_v40 = vadd.f32 %v1218_v5, %v788_v41  ;;  %v955_v58 = vpack.c.bf16 %v944_v51, %v943_v43  ;;  %v942_v4 = vmax.f32 %v899_v10, 0.0 }
 0x212   :  { %v911_v8 = vpop.f32.mrf.mxu0 }
 0x213   :  { %v947_v36 = vmax.f32 %v920_v40, 0.0  ;;  %v912_v38 = vadd.f32 %v911_v8, %v778_v54  ;;  %v954_v7 = vpack.c.bf16 %v942_v4, %v941_v32 }
 0x214   :  { %v1219_v12 = vpop.f32.mrf.mxu0 }
 0x215   :  { %v923_v26 = vadd.f32 %v1219_v12, %v793_v18  ;;  %v945_v30 = vmax.f32 %v912_v38, 0.0 }
 0x216   :  { %v914_v13 = vpop.f32.mrf.mxu0 }
 0x217   :  { %v948_v24 = vmax.f32 %v923_v26, 0.0  ;;  %v915_v56 = vadd.f32 %v914_v13, %v783_v52 }
 0x218   :  { %v1222_v22 = vpop.f32.mrf.mxu0 }
 0x219   :  { %v936_v37 = vadd.f32 %v1222_v22, %v808_v0  ;;  %v957_v31 = vpack.c.bf16 %v948_v24, %v947_v36  ;;  %v946_v17 = vmax.f32 %v915_v56, 0.0 }
 0x21a   :  { %v927_v45 = vpop.f32.mrf.mxu0 }
 0x21b   :  { %v951_v49 = vmax.f32 %v936_v37, 0.0  ;;  %v928_v50 = vadd.f32 %v927_v45, %v798_v11  ;;  %v956_v33 = vpack.c.bf16 %v946_v17, %v945_v30 }
 0x21c   :  { %v1223_v48 = vpop.f32.mrf.mxu0 }
 0x21d   :  { %v959_v25 = vpack.c.bf16 %v951_v49, %v951_v49  ;;  %v949_v42 = vmax.f32 %v928_v50, 0.0 }
 0x21e   :  { %v930_v44 = vpop.f32.mrf.mxu0 }
 0x21f   :  { %v931_v46 = vadd.f32 %v930_v44, %v803_v6  ;;  %v983_v53 = vsel %vm981_vm4, %v959_v25, 0 }
 0x220   :  { %1225 = vmatpush3.bf16.msra.mxu1 %v983_v53 }
 0x221   :  { %v950_v29 = vmax.f32 %v931_v46, 0.0  ;;  %1226 = vmatprep.subr.bf16.mxu1 %v1325_v20 }
 0x223   :  { %v958_v57 = vpack.c.bf16 %v950_v29, %v949_v42 }
 0x225   :  { %1227 = vmatpush3.bf16.msra.mxu1 %v958_v57 }
 0x226   :  { %1228 = vmatprep.subr.bf16.mxu1 %v1325_v20 }
 0x229   :  { %1229 = vmatpush3.bf16.msra.mxu1 %v957_v31 }
 0x22a   :  { %1230 = vmatprep.subr.bf16.mxu1 %v1325_v20 }
 0x22d   :  { %1231 = vmatpush3.bf16.msra.mxu1 %v956_v33 }
 0x22e   :  { %1232 = vmatprep.subr.bf16.mxu1 %v1325_v20 }
 0x231   :  { %1233 = vmatpush3.bf16.msra.mxu1 %v955_v58 }
 0x232   :  { %1234 = vmatprep.subr.bf16.mxu1 %v1325_v20 }
 0x235   :  { %1235 = vmatpush3.bf16.msra.mxu1 %v954_v7 }
 0x238   :  { %1237 = vmatmul.mubr.msk.bf16.vlgmr.msra.gmra.mxu1 %vm977_vm5, %v1323_v39 }
 0x2f8   :  { %v1019_v35 = vpop.f32.mrf.mxu1 }
 0x2f9   :  { %v1020_v27 = vadd.f32 %v1019_v35, %v965_v59 }
 0x2fa   :  { %v1238_v60 = vpop.f32.mrf.mxu1 }
 0x2fb   :  { %1026 = vst [vmem:[%s1750_s7] sm:$0xff] %v1020_v27 }
 0x2fc   :  { %v1022_v34 = vpop.f32.mrf.mxu1 }
 0x2fd   :  { %v1023_v9 = vadd.f32 %v1022_v34, %v970_v61 }
 0x2fe   :  { %v1239_v15 = vpop.f32.mrf.mxu1 }
 0x2ff   :  { %1027 = vst [vmem:[%s1750_s7 + $0x8] sm:$0x3] %v1023_v9 }

</bundles_post_ra>
